<compile_context>
chip_gen: v6e
topology: v6e:2x2x1
jax: 0.10.0
libtpu: 0.0.40
codegen_flags: <defaults>
</compile_context>

<pallas_src>
import jax
import jax.numpy as jnp
from jax.experimental import pallas as pl
from jax.experimental.pallas import tpu as pltpu


_NEG_INF = -1e30  # used for padded class logits (exp() underflows to 0)


def _round_up(x, m):
    return (x + m - 1) // m * m


# -----------------------------------------------------------------------------
# Fused branch kernel: conv3x3(BN-folded) + shift + ReLU + conv1x1 + log_softmax
# -----------------------------------------------------------------------------
def _c1_branch_kernel(xb_ref, xt_ref, xbt_ref, w3_ref, bsh_ref, w1_ref, b1_ref,
                      out_ref):
    # xb_ref : (1, TH, W, Cin)  f32   body rows of this tile
    # xt_ref : (1, 1, W, Cin)   f32   row above the tile (clamped at the edge)
    # xbt_ref: (1, 1, W, Cin)   f32   row below the tile (clamped at the edge)
    # w3_ref : (3, 3, Cin, Cmid)bf16  3x3 weights with BN scale folded in
    # bsh_ref: (1, Cmid)        f32   BN shift (bias before ReLU)
    # w1_ref : (Cmid, Cnp)      f32   1x1 weights (zero-padded rows/cols)
    # b1_ref : (1, Cnp)         f32   1x1 bias (-1e30 on padded classes)
    # out_ref: (1, TH*W, Cnp)   f32   log_softmax(logits), lane-dense store
    r = pl.program_id(1)
    num_r = pl.num_programs(1)
    _, TH, W, Cin = xb_ref.shape
    Cmid = w3_ref.shape[-1]

    body = xb_ref[0]                                    # (TH, W, Cin) f32
    top = xt_ref[0, 0]                                  # (W, Cin)
    bot = xbt_ref[0, 0]
    # Zero the halo rows at the image top/bottom (they were clamped reads).
    top = top * jnp.where(r == 0, 0.0, 1.0).astype(top.dtype)
    bot = bot * jnp.where(r == num_r - 1, 0.0, 1.0).astype(bot.dtype)

    # (TH+2, W, Cin) halo tile, flattened to rows and cast once to bf16.
    tile = jnp.concatenate([top[None], body, bot[None]], axis=0)
    tile = tile.reshape((TH + 2) * W, Cin).astype(jnp.bfloat16)

    # 3x3 conv as 9 full-width matmuls; one f32 accumulator per kx tap.
    acc0 = jnp.zeros((TH * W, Cmid), jnp.float32)   # kx=0  -> input col w-1
    acc1 = jnp.zeros((TH * W, Cmid), jnp.float32)   # kx=1  -> input col w
    acc2 = jnp.zeros((TH * W, Cmid), jnp.float32)   # kx=2  -> input col w+1
    for ky in range(3):
        rows = tile[ky * W:(ky + TH) * W]           # (TH*W, Cin) bf16
        acc0 = acc0 + jnp.dot(rows, w3_ref[ky, 0],
                              preferred_element_type=jnp.float32)
        acc1 = acc1 + jnp.dot(rows, w3_ref[ky, 1],
                              preferred_element_type=jnp.float32)
        acc2 = acc2 + jnp.dot(rows, w3_ref[ky, 2],
                              preferred_element_type=jnp.float32)

    # Apply the +-1 column shifts on the narrow Cmid-wide accumulators
    # (zero column realizes the W-edge zero padding).
    a0 = acc0.reshape(TH, W, Cmid)
    a2 = acc2.reshape(TH, W, Cmid)
    zcol = jnp.zeros((TH, 1, Cmid), jnp.float32)
    left = jnp.concatenate([zcol, a0[:, :W - 1, :]], axis=1)    # col w-1
    right = jnp.concatenate([a2[:, 1:, :], zcol], axis=1)       # col w+1
    conv = acc1 + (left + right).reshape(TH * W, Cmid)

    # BN shift + ReLU (f32), then the small 1x1 head in f32.
    y = jnp.maximum(conv + bsh_ref[...], 0.0)
    logits = jnp.dot(y, w1_ref[...],
                     preferred_element_type=jnp.float32) + b1_ref[...]

    # log_softmax over the (128-padded, lane-dense) class dim.
    m = jnp.max(logits, axis=-1, keepdims=True)
    z = logits - m
    lse = jnp.log(jnp.sum(jnp.exp(z), axis=-1, keepdims=True))
    out_ref[...] = (z - lse)[None]                  # (1, TH*W, Cnp)


def c1_branch(x_nhwc, w3f, bshift, w1p, b1p):
    """x_nhwc: (N, H, W, Cin) f32 (unpadded).  Returns (N, H, W, Cnp) f32."""
    N, H, W, Cin = x_nhwc.shape
    Cmid = w3f.shape[-1]
    Cnp = w1p.shape[-1]
    # Rows per tile: ~a few MB of VMEM per buffer at real C1DeepSup shapes
    # (fc_dim=2048) so double-buffering fits v7x's 64 MiB VMEM; tune per gen.
    TH = 8 if H % 8 == 0 else H
    R = H // TH

    out = pl.pallas_call(
        _c1_branch_kernel,
        out_shape=jax.ShapeDtypeStruct((N, H * W, Cnp), jnp.float32),
        grid=(N, R),
        in_specs=[
            # body rows of the tile
            pl.BlockSpec((1, TH, W, Cin), lambda n, r: (n, r, 0, 0)),
            # halo row above (clamped; zeroed in-kernel at r == 0)
            pl.BlockSpec((1, 1, W, Cin),
                         lambda n, r: (n, jnp.maximum(r * TH - 1, 0), 0, 0)),
            # halo row below (clamped; zeroed in-kernel at r == R-1)
            pl.BlockSpec((1, 1, W, Cin),
                         lambda n, r: (n, jnp.minimum(r * TH + TH, H - 1), 0, 0)),
            pl.BlockSpec((3, 3, Cin, Cmid), lambda n, r: (0, 0, 0, 0)),
            pl.BlockSpec((1, Cmid), lambda n, r: (0, 0)),
            pl.BlockSpec((Cmid, Cnp), lambda n, r: (0, 0)),
            pl.BlockSpec((1, Cnp), lambda n, r: (0, 0)),
        ],
        out_specs=pl.BlockSpec((1, TH * W, Cnp), lambda n, r: (n, r, 0)),
        compiler_params=pltpu.CompilerParams(
            dimension_semantics=("parallel", "parallel"),
            vmem_limit_bytes=48 * 1024 * 1024),
    )(x_nhwc, x_nhwc, x_nhwc, w3f, bshift, w1p, b1p)
    return out.reshape(N, H, W, Cnp)


# -----------------------------------------------------------------------------
# Parameter folding / padding (done once per call in the wrapper)
# -----------------------------------------------------------------------------
def _fold_and_pad(w3, scale, shift, w1, b1, cmid_p, cnum_p):
    cmid = w3.shape[-1]
    cnum = w1.shape[-1]
    # Fold BN scale into the 3x3 weights, then cast to bf16 for the MXU.
    w3f = (w3 * scale[0]).astype(jnp.bfloat16)
    w3f = jnp.pad(w3f, ((0, 0), (0, 0), (0, 0), (0, cmid_p - cmid)))
    bsh = jnp.pad(shift, ((0, 0), (0, cmid_p - cmid)))
    # 1x1 head stays f32 (tiny fraction of the FLOPs; keeps logits exact).
    w1p = jnp.pad(w1, ((0, cmid_p - cmid), (0, cnum_p - cnum)))
    b1p = jnp.pad(b1, ((0, 0), (0, cnum_p - cnum)), constant_values=_NEG_INF)
    return w3f, bsh, w1p, b1p


# -----------------------------------------------------------------------------
# C1DeepSup module (JAX glue around the Pallas kernels)
# -----------------------------------------------------------------------------
def make_params(key, num_class, fc_dim):
    """Synthetic parameters. Conv weights stored HWIO / (Cin, Cout); BN folded
    to (scale, shift) as in eval-mode BatchNorm."""
    cmid = fc_dim // 4
    ks = jax.random.split(key, 14)
    eps = 1e-5

    def bn(kg, kb, km, kv, c):
        gamma = 1.0 + 0.1 * jax.random.normal(kg, (c,), jnp.float32)
        beta = 0.1 * jax.random.normal(kb, (c,), jnp.float32)
        mean = 0.1 * jax.random.normal(km, (c,), jnp.float32)
        var = jnp.abs(jax.random.normal(kv, (c,), jnp.float32)) + 0.5
        scale = gamma / jnp.sqrt(var + eps)
        shift = beta - mean * scale
        return scale.reshape(1, c), shift.reshape(1, c)

    p = {}
    p["cbr_w"] = 0.05 * jax.random.normal(ks[0], (3, 3, fc_dim, cmid), jnp.float32)
    p["cbr_scale"], p["cbr_shift"] = bn(ks[1], ks[2], ks[3], ks[4], cmid)
    p["ds_w"] = 0.05 * jax.random.normal(ks[5], (3, 3, fc_dim // 2, cmid), jnp.float32)
    p["ds_scale"], p["ds_shift"] = bn(ks[6], ks[7], ks[8], ks[9], cmid)
    p["last_w"] = 0.1 * jax.random.normal(ks[10], (cmid, num_class), jnp.float32)
    p["last_b"] = 0.05 * jax.random.normal(ks[11], (1, num_class), jnp.float32)
    p["lastds_w"] = 0.1 * jax.random.normal(ks[12], (cmid, num_class), jnp.float32)
    p["lastds_b"] = 0.05 * jax.random.normal(ks[13], (1, num_class), jnp.float32)
    return p


@jax.jit
def c1_deepsup_forward(params, conv4_nchw, conv5_nchw):
    """Mirrors C1DeepSup.forward with use_softmax=False, drop_last_conv=False.
    Returns (log_softmax main, log_softmax deepsup), both NCHW over dim=1."""
    cmid = params["last_w"].shape[0]
    num_class = params["last_w"].shape[1]
    cmid_p = _round_up(cmid, 128)
    cnum_p = _round_up(num_class, 128)

    def run(x_nchw, w3, scale, shift, w1, b1):
        x = jnp.transpose(x_nchw, (0, 2, 3, 1))            # NCHW -> NHWC
        w3f, bsh, w1p, b1p = _fold_and_pad(w3, scale, shift, w1, b1,
                                           cmid_p, cnum_p)
        out = c1_branch(x, w3f, bsh, w1p, b1p)              # (N, H, W, cnum_p)
        out = out[..., :num_class]
        return jnp.transpose(out, (0, 3, 1, 2))             # back to NCHW

    x_main = run(conv5_nchw, params["cbr_w"], params["cbr_scale"],
                 params["cbr_shift"], params["last_w"], params["last_b"])
    x_ds = run(conv4_nchw, params["ds_w"], params["ds_scale"],
               params["ds_shift"], params["lastds_w"], params["lastds_b"])
    # TODO(synk): the use_softmax=True inference branch (bilinear interpolate to
    # segSize + softmax) is not implemented; default forward does not use it.
    return x_main, x_ds


# -----------------------------------------------------------------------------
# Pure-JAX reference (same bf16 3x3-conv operands / f32 accumulation)
# -----------------------------------------------------------------------------
def ref_branch(x_nchw, w3, scale, shift, w1, b1):
    x = jnp.transpose(x_nchw, (0, 2, 3, 1))
    w3f = (w3 * scale[0]).astype(jnp.bfloat16)
    y = jax.lax.conv_general_dilated(
        x.astype(jnp.bfloat16), w3f, window_strides=(1, 1), padding="SAME",
        dimension_numbers=("NHWC", "HWIO", "NHWC"),
        preferred_element_type=jnp.float32)
    y = jnp.maximum(y + shift[0], 0.0)
    logits = jnp.einsum("nhwc,cd->nhwd", y, w1,
                        preferred_element_type=jnp.float32) + b1[0]
    out = jax.nn.log_softmax(logits, axis=-1)
    return jnp.transpose(out, (0, 3, 1, 2))


if __name__ == "__main__":
    # Small shapes consistent with the module:
    #   fc_dim=32 -> cbr: 32->8, cbr_deepsup: 16->8, num_class=16
    #   conv5 (last feature): (N, fc_dim,   H5, W5)
    #   conv4 (prev feature): (N, fc_dim/2, H4, W4)  (2x spatial, as in ResNet)
    N, fc_dim, num_class = 2, 32, 16
    H5 = W5 = 8
    H4 = W4 = 16

    key = jax.random.PRNGKey(0)
    k_p, k_c5, k_c4 = jax.random.split(key, 3)
    params = make_params(k_p, num_class, fc_dim)
    conv5 = jax.random.normal(k_c5, (N, fc_dim, H5, W5), jnp.float32)
    conv4 = jax.random.normal(k_c4, (N, fc_dim // 2, H4, W4), jnp.float32)

    x_main, x_ds = c1_deepsup_forward(params, conv4, conv5)
    jax.block_until_ready((x_main, x_ds))

    ref_main = ref_branch(conv5, params["cbr_w"], params["cbr_scale"],
                          params["cbr_shift"], params["last_w"], params["last_b"])
    ref_ds = ref_branch(conv4, params["ds_w"], params["ds_scale"],
                        params["ds_shift"], params["lastds_w"], params["lastds_b"])

    assert x_main.shape == (N, num_class, H5, W5)
    assert x_ds.shape == (N, num_class, H4, W4)
    err1 = float(jnp.max(jnp.abs(x_main - ref_main)))
    err2 = float(jnp.max(jnp.abs(x_ds - ref_ds)))
    assert err1 < 5e-4 and err2 < 5e-4, (err1, err2)

    print("KERNEL_OK")
</pallas_src>

<mosaic_0001>
module attributes {stable_mosaic.version = 11 : i64} {
  func.func @_c1_branch_kernel(%arg0: i32, %arg1: i32, %arg2: memref<1x8x16x16xf32, #tpu.memory_space<vmem>>, %arg3: memref<1x1x16x16xf32, #tpu.memory_space<vmem>>, %arg4: memref<1x1x16x16xf32, #tpu.memory_space<vmem>>, %arg5: memref<3x3x16x128xbf16, #tpu.memory_space<vmem>>, %arg6: memref<1x128xf32, #tpu.memory_space<vmem>>, %arg7: memref<128x128xf32, #tpu.memory_space<vmem>>, %arg8: memref<1x128xf32, #tpu.memory_space<vmem>>, %arg9: memref<1x128x128xf32, #tpu.memory_space<vmem>>) attributes {dimension_semantics = [#tpu.dimension_semantics<parallel>, #tpu.dimension_semantics<parallel>], iteration_bounds = array<i64: 2, 2>, scalar_prefetch = 0 : i64, scratch_operands = 0 : i64, tpu.core_type = #tpu.core_type<tc>, window_params = [{transform_indices = @transform_0, window_bounds = array<i64: 1, 8, 16, 16>}, {transform_indices = @transform_1, window_bounds = array<i64: 1, 1, 16, 16>}, {transform_indices = @transform_2, window_bounds = array<i64: 1, 1, 16, 16>}, {pipeline_mode = #tpu.pipeline_mode<synchronous>, transform_indices = @transform_3, window_bounds = array<i64: 3, 3, 16, 128>}, {pipeline_mode = #tpu.pipeline_mode<synchronous>, transform_indices = @transform_4, window_bounds = array<i64: 1, 128>}, {pipeline_mode = #tpu.pipeline_mode<synchronous>, transform_indices = @transform_5, window_bounds = array<i64: 128, 128>}, {pipeline_mode = #tpu.pipeline_mode<synchronous>, transform_indices = @transform_6, window_bounds = array<i64: 1, 128>}, {transform_indices = @transform_7, window_bounds = array<i64: 1, 128, 128>}]} {
    %c0 = arith.constant 0 : index
    %c0_0 = arith.constant 0 : index
    %c0_1 = arith.constant 0 : index
    %c0_2 = arith.constant 0 : index
    %0 = vector.load %arg2[%c0, %c0_0, %c0_1, %c0_2] : memref<1x8x16x16xf32, #tpu.memory_space<vmem>>, vector<1x8x16x16xf32>
    %1 = vector.shape_cast %0 : vector<1x8x16x16xf32> to vector<8x16x16xf32>
    %c0_3 = arith.constant 0 : index
    %c0_4 = arith.constant 0 : index
    %c0_5 = arith.constant 0 : index
    %c0_6 = arith.constant 0 : index
    %2 = vector.load %arg3[%c0_3, %c0_4, %c0_5, %c0_6] : memref<1x1x16x16xf32, #tpu.memory_space<vmem>>, vector<1x1x16x16xf32>
    %3 = vector.shape_cast %2 : vector<1x1x16x16xf32> to vector<16x16xf32>
    %c0_7 = arith.constant 0 : index
    %c0_8 = arith.constant 0 : index
    %c0_9 = arith.constant 0 : index
    %c0_10 = arith.constant 0 : index
    %4 = vector.load %arg4[%c0_7, %c0_8, %c0_9, %c0_10] : memref<1x1x16x16xf32, #tpu.memory_space<vmem>>, vector<1x1x16x16xf32>
    %5 = vector.shape_cast %4 : vector<1x1x16x16xf32> to vector<16x16xf32>
    %c0_i32 = arith.constant 0 : i32
    %6 = arith.cmpi eq, %arg1, %c0_i32 : i32
    %cst = arith.constant 0.000000e+00 : f32
    %cst_11 = arith.constant 1.000000e+00 : f32
    %7 = arith.select %6, %cst, %cst_11 : f32
    %8 = vector.broadcast %7 : f32 to vector<16x16xf32>
    %9 = arith.mulf %3, %8 : vector<16x16xf32>
    %c1_i32 = arith.constant 1 : i32
    %10 = arith.cmpi eq, %arg1, %c1_i32 : i32
    %cst_12 = arith.constant 0.000000e+00 : f32
    %cst_13 = arith.constant 1.000000e+00 : f32
    %11 = arith.select %10, %cst_12, %cst_13 : f32
    %12 = vector.broadcast %11 : f32 to vector<16x16xf32>
    %13 = arith.mulf %5, %12 : vector<16x16xf32>
    %14 = vector.shape_cast %9 : vector<16x16xf32> to vector<1x16x16xf32>
    %15 = vector.shape_cast %13 : vector<16x16xf32> to vector<1x16x16xf32>
    %16 = tpu.concatenate %14, %1, %15 in 0 : vector<1x16x16xf32>, vector<8x16x16xf32>, vector<1x16x16xf32> -> vector<10x16x16xf32>
    %17 = vector.shape_cast %16 : vector<10x16x16xf32> to vector<160x16xf32>
    %18 = arith.truncf %17 : vector<160x16xf32> to vector<160x16xbf16>
    %cst_14 = arith.constant 0.000000e+00 : f32
    %19 = vector.broadcast %cst_14 : f32 to vector<128x128xf32>
    %cst_15 = arith.constant 0.000000e+00 : f32
    %20 = vector.broadcast %cst_15 : f32 to vector<128x128xf32>
    %cst_16 = arith.constant 0.000000e+00 : f32
    %21 = vector.broadcast %cst_16 : f32 to vector<128x128xf32>
    %22 = vector.extract_strided_slice %18 {offsets = [0, 0], sizes = [128, 16], strides = [1, 1]} : vector<160x16xbf16> to vector<128x16xbf16>
    %c0_17 = arith.constant 0 : index
    %c0_18 = arith.constant 0 : index
    %c0_19 = arith.constant 0 : index
    %c0_20 = arith.constant 0 : index
    %23 = vector.load %arg5[%c0_17, %c0_18, %c0_19, %c0_20] : memref<3x3x16x128xbf16, #tpu.memory_space<vmem>>, vector<1x1x16x128xbf16>
    %24 = vector.shape_cast %23 : vector<1x1x16x128xbf16> to vector<16x128xbf16>
    %cst_21 = arith.constant dense<0.000000e+00> : vector<128x128xf32>
    %25 = tpu.matmul %22, %24, %cst_21 {dimension_numbers = #tpu.dot_dimension_numbers<[1], [0], [0], [1], [0, 0, 1, 1], [], []>} : vector<128x16xbf16>, vector<16x128xbf16>, vector<128x128xf32> -> vector<128x128xf32>
    %26 = arith.addf %19, %25 : vector<128x128xf32>
    %c0_22 = arith.constant 0 : index
    %c1 = arith.constant 1 : index
    %c0_23 = arith.constant 0 : index
    %c0_24 = arith.constant 0 : index
    %27 = vector.load %arg5[%c0_22, %c1, %c0_23, %c0_24] : memref<3x3x16x128xbf16, #tpu.memory_space<vmem>>, vector<1x1x16x128xbf16>
    %28 = vector.shape_cast %27 : vector<1x1x16x128xbf16> to vector<16x128xbf16>
    %cst_25 = arith.constant dense<0.000000e+00> : vector<128x128xf32>
    %29 = tpu.matmul %22, %28, %cst_25 {dimension_numbers = #tpu.dot_dimension_numbers<[1], [0], [0], [1], [0, 0, 1, 1], [], []>} : vector<128x16xbf16>, vector<16x128xbf16>, vector<128x128xf32> -> vector<128x128xf32>
    %30 = arith.addf %20, %29 : vector<128x128xf32>
    %c0_26 = arith.constant 0 : index
    %c2 = arith.constant 2 : index
    %c0_27 = arith.constant 0 : index
    %c0_28 = arith.constant 0 : index
    %31 = vector.load %arg5[%c0_26, %c2, %c0_27, %c0_28] : memref<3x3x16x128xbf16, #tpu.memory_space<vmem>>, vector<1x1x16x128xbf16>
    %32 = vector.shape_cast %31 : vector<1x1x16x128xbf16> to vector<16x128xbf16>
    %cst_29 = arith.constant dense<0.000000e+00> : vector<128x128xf32>
    %33 = tpu.matmul %22, %32, %cst_29 {dimension_numbers = #tpu.dot_dimension_numbers<[1], [0], [0], [1], [0, 0, 1, 1], [], []>} : vector<128x16xbf16>, vector<16x128xbf16>, vector<128x128xf32> -> vector<128x128xf32>
    %34 = arith.addf %21, %33 : vector<128x128xf32>
    %35 = vector.extract_strided_slice %18 {offsets = [16, 0], sizes = [128, 16], strides = [1, 1]} : vector<160x16xbf16> to vector<128x16xbf16>
    %c1_30 = arith.constant 1 : index
    %c0_31 = arith.constant 0 : index
    %c0_32 = arith.constant 0 : index
    %c0_33 = arith.constant 0 : index
    %36 = vector.load %arg5[%c1_30, %c0_31, %c0_32, %c0_33] : memref<3x3x16x128xbf16, #tpu.memory_space<vmem>>, vector<1x1x16x128xbf16>
    %37 = vector.shape_cast %36 : vector<1x1x16x128xbf16> to vector<16x128xbf16>
    %cst_34 = arith.constant dense<0.000000e+00> : vector<128x128xf32>
    %38 = tpu.matmul %35, %37, %cst_34 {dimension_numbers = #tpu.dot_dimension_numbers<[1], [0], [0], [1], [0, 0, 1, 1], [], []>} : vector<128x16xbf16>, vector<16x128xbf16>, vector<128x128xf32> -> vector<128x128xf32>
    %39 = arith.addf %26, %38 : vector<128x128xf32>
    %c1_35 = arith.constant 1 : index
    %c1_36 = arith.constant 1 : index
    %c0_37 = arith.constant 0 : index
    %c0_38 = arith.constant 0 : index
    %40 = vector.load %arg5[%c1_35, %c1_36, %c0_37, %c0_38] : memref<3x3x16x128xbf16, #tpu.memory_space<vmem>>, vector<1x1x16x128xbf16>
    %41 = vector.shape_cast %40 : vector<1x1x16x128xbf16> to vector<16x128xbf16>
    %cst_39 = arith.constant dense<0.000000e+00> : vector<128x128xf32>
    %42 = tpu.matmul %35, %41, %cst_39 {dimension_numbers = #tpu.dot_dimension_numbers<[1], [0], [0], [1], [0, 0, 1, 1], [], []>} : vector<128x16xbf16>, vector<16x128xbf16>, vector<128x128xf32> -> vector<128x128xf32>
    %43 = arith.addf %30, %42 : vector<128x128xf32>
    %c1_40 = arith.constant 1 : index
    %c2_41 = arith.constant 2 : index
    %c0_42 = arith.constant 0 : index
    %c0_43 = arith.constant 0 : index
    %44 = vector.load %arg5[%c1_40, %c2_41, %c0_42, %c0_43] : memref<3x3x16x128xbf16, #tpu.memory_space<vmem>>, vector<1x1x16x128xbf16>
    %45 = vector.shape_cast %44 : vector<1x1x16x128xbf16> to vector<16x128xbf16>
    %cst_44 = arith.constant dense<0.000000e+00> : vector<128x128xf32>
    %46 = tpu.matmul %35, %45, %cst_44 {dimension_numbers = #tpu.dot_dimension_numbers<[1], [0], [0], [1], [0, 0, 1, 1], [], []>} : vector<128x16xbf16>, vector<16x128xbf16>, vector<128x128xf32> -> vector<128x128xf32>
    %47 = arith.addf %34, %46 : vector<128x128xf32>
    %48 = vector.extract_strided_slice %18 {offsets = [32, 0], sizes = [128, 16], strides = [1, 1]} : vector<160x16xbf16> to vector<128x16xbf16>
    %c2_45 = arith.constant 2 : index
    %c0_46 = arith.constant 0 : index
    %c0_47 = arith.constant 0 : index
    %c0_48 = arith.constant 0 : index
    %49 = vector.load %arg5[%c2_45, %c0_46, %c0_47, %c0_48] : memref<3x3x16x128xbf16, #tpu.memory_space<vmem>>, vector<1x1x16x128xbf16>
    %50 = vector.shape_cast %49 : vector<1x1x16x128xbf16> to vector<16x128xbf16>
    %cst_49 = arith.constant dense<0.000000e+00> : vector<128x128xf32>
    %51 = tpu.matmul %48, %50, %cst_49 {dimension_numbers = #tpu.dot_dimension_numbers<[1], [0], [0], [1], [0, 0, 1, 1], [], []>} : vector<128x16xbf16>, vector<16x128xbf16>, vector<128x128xf32> -> vector<128x128xf32>
    %52 = arith.addf %39, %51 : vector<128x128xf32>
    %c2_50 = arith.constant 2 : index
    %c1_51 = arith.constant 1 : index
    %c0_52 = arith.constant 0 : index
    %c0_53 = arith.constant 0 : index
    %53 = vector.load %arg5[%c2_50, %c1_51, %c0_52, %c0_53] : memref<3x3x16x128xbf16, #tpu.memory_space<vmem>>, vector<1x1x16x128xbf16>
    %54 = vector.shape_cast %53 : vector<1x1x16x128xbf16> to vector<16x128xbf16>
    %cst_54 = arith.constant dense<0.000000e+00> : vector<128x128xf32>
    %55 = tpu.matmul %48, %54, %cst_54 {dimension_numbers = #tpu.dot_dimension_numbers<[1], [0], [0], [1], [0, 0, 1, 1], [], []>} : vector<128x16xbf16>, vector<16x128xbf16>, vector<128x128xf32> -> vector<128x128xf32>
    %56 = arith.addf %43, %55 : vector<128x128xf32>
    %c2_55 = arith.constant 2 : index
    %c2_56 = arith.constant 2 : index
    %c0_57 = arith.constant 0 : index
    %c0_58 = arith.constant 0 : index
    %57 = vector.load %arg5[%c2_55, %c2_56, %c0_57, %c0_58] : memref<3x3x16x128xbf16, #tpu.memory_space<vmem>>, vector<1x1x16x128xbf16>
    %58 = vector.shape_cast %57 : vector<1x1x16x128xbf16> to vector<16x128xbf16>
    %cst_59 = arith.constant dense<0.000000e+00> : vector<128x128xf32>
    %59 = tpu.matmul %48, %58, %cst_59 {dimension_numbers = #tpu.dot_dimension_numbers<[1], [0], [0], [1], [0, 0, 1, 1], [], []>} : vector<128x16xbf16>, vector<16x128xbf16>, vector<128x128xf32> -> vector<128x128xf32>
    %60 = arith.addf %47, %59 : vector<128x128xf32>
    %61 = vector.shape_cast %52 : vector<128x128xf32> to vector<8x16x128xf32>
    %62 = vector.shape_cast %60 : vector<128x128xf32> to vector<8x16x128xf32>
    %cst_60 = arith.constant 0.000000e+00 : f32
    %63 = vector.broadcast %cst_60 : f32 to vector<8x1x128xf32>
    %64 = vector.extract_strided_slice %61 {offsets = [0, 0, 0], sizes = [8, 15, 128], strides = [1, 1, 1]} : vector<8x16x128xf32> to vector<8x15x128xf32>
    %65 = tpu.concatenate %63, %64 in 1 : vector<8x1x128xf32>, vector<8x15x128xf32> -> vector<8x16x128xf32>
    %66 = vector.extract_strided_slice %62 {offsets = [0, 1, 0], sizes = [8, 15, 128], strides = [1, 1, 1]} : vector<8x16x128xf32> to vector<8x15x128xf32>
    %67 = tpu.concatenate %66, %63 in 1 : vector<8x15x128xf32>, vector<8x1x128xf32> -> vector<8x16x128xf32>
    %68 = arith.addf %65, %67 : vector<8x16x128xf32>
    %69 = vector.shape_cast %68 : vector<8x16x128xf32> to vector<128x128xf32>
    %70 = arith.addf %56, %69 : vector<128x128xf32>
    %c0_61 = arith.constant 0 : index
    %c0_62 = arith.constant 0 : index
    %71 = vector.load %arg6[%c0_61, %c0_62] : memref<1x128xf32, #tpu.memory_space<vmem>>, vector<1x128xf32>
    %72 = vector.broadcast %71 : vector<1x128xf32> to vector<128x128xf32>
    %73 = arith.addf %70, %72 : vector<128x128xf32>
    %cst_63 = arith.constant 0.000000e+00 : f32
    %74 = vector.broadcast %cst_63 : f32 to vector<128x128xf32>
    %75 = arith.maximumf %73, %74 : vector<128x128xf32>
    %c0_64 = arith.constant 0 : index
    %c0_65 = arith.constant 0 : index
    %76 = vector.load %arg7[%c0_64, %c0_65] : memref<128x128xf32, #tpu.memory_space<vmem>>, vector<128x128xf32>
    %cst_66 = arith.constant dense<0.000000e+00> : vector<128x128xf32>
    %77 = tpu.matmul %75, %76, %cst_66 {dimension_numbers = #tpu.dot_dimension_numbers<[1], [0], [0], [1], [0, 0, 1, 1], [], []>} : vector<128x128xf32>, vector<128x128xf32>, vector<128x128xf32> -> vector<128x128xf32>
    %c0_67 = arith.constant 0 : index
    %c0_68 = arith.constant 0 : index
    %78 = vector.load %arg8[%c0_67, %c0_68] : memref<1x128xf32, #tpu.memory_space<vmem>>, vector<1x128xf32>
    %79 = vector.broadcast %78 : vector<1x128xf32> to vector<128x128xf32>
    %80 = arith.addf %77, %79 : vector<128x128xf32>
    %cst_69 = arith.constant dense<0xFF800000> : vector<128xf32>
    %81 = vector.multi_reduction <maximumf>, %80, %cst_69 [1] : vector<128x128xf32> to vector<128xf32>
    %82 = vector.shape_cast %81 : vector<128xf32> to vector<128x1xf32>
    %83 = vector.broadcast %82 : vector<128x1xf32> to vector<128x128xf32>
    %84 = arith.subf %80, %83 : vector<128x128xf32>
    %85 = math.exp %84 : vector<128x128xf32>
    %cst_70 = arith.constant dense<0.000000e+00> : vector<128xf32>
    %86 = vector.multi_reduction <add>, %85, %cst_70 [1] : vector<128x128xf32> to vector<128xf32>
    %87 = vector.shape_cast %86 : vector<128xf32> to vector<128x1xf32>
    %88 = math.log %87 : vector<128x1xf32>
    %89 = vector.broadcast %88 : vector<128x1xf32> to vector<128x128xf32>
    %90 = arith.subf %84, %89 : vector<128x128xf32>
    %91 = vector.shape_cast %90 : vector<128x128xf32> to vector<1x128x128xf32>
    %c0_71 = arith.constant 0 : index
    %c0_72 = arith.constant 0 : index
    %c0_73 = arith.constant 0 : index
    %92 = vector.load %arg9[%c0_71, %c0_72, %c0_73] : memref<1x128x128xf32, #tpu.memory_space<vmem>>, vector<1x128x128xf32>
    tpu.vector_store %arg9[%c0_71, %c0_72, %c0_73], %91 {strides = array<i32>} : memref<1x128x128xf32, #tpu.memory_space<vmem>>, vector<1x128x128xf32>,
    return
  }
  func.func @transform_0(%arg0: i32, %arg1: i32) -> (i32, i32, i32, i32) {
    %c0_i32 = arith.constant 0 : i32
    %c0_i32_0 = arith.constant 0 : i32
    %c0_i32_1 = arith.constant 0 : i32
    return %arg0, %arg1, %c0_i32, %c0_i32_0 : i32, i32, i32, i32
  }
  func.func @transform_1(%arg0: i32, %arg1: i32) -> (i32, i32, i32, i32) {
    %c8_i32 = arith.constant 8 : i32
    %0 = arith.muli %arg1, %c8_i32 : i32
    %c1_i32 = arith.constant 1 : i32
    %1 = arith.subi %0, %c1_i32 : i32
    %c0_i32 = arith.constant 0 : i32
    %2 = arith.maxsi %1, %c0_i32 : i32
    %c0_i32_0 = arith.constant 0 : i32
    %c0_i32_1 = arith.constant 0 : i32
    %c0_i32_2 = arith.constant 0 : i32
    return %arg0, %2, %c0_i32_0, %c0_i32_1 : i32, i32, i32, i32
  }
  func.func @transform_2(%arg0: i32, %arg1: i32) -> (i32, i32, i32, i32) {
    %c8_i32 = arith.constant 8 : i32
    %0 = arith.muli %arg1, %c8_i32 : i32
    %c8_i32_0 = arith.constant 8 : i32
    %1 = arith.addi %0, %c8_i32_0 : i32
    %c15_i32 = arith.constant 15 : i32
    %2 = arith.minsi %1, %c15_i32 : i32
    %c0_i32 = arith.constant 0 : i32
    %c0_i32_1 = arith.constant 0 : i32
    %c0_i32_2 = arith.constant 0 : i32
    return %arg0, %2, %c0_i32, %c0_i32_1 : i32, i32, i32, i32
  }
  func.func @transform_3(%arg0: i32, %arg1: i32) -> (i32, i32, i32, i32) {
    %c0_i32 = arith.constant 0 : i32
    %c0_i32_0 = arith.constant 0 : i32
    %c0_i32_1 = arith.constant 0 : i32
    %c0_i32_2 = arith.constant 0 : i32
    %c0_i32_3 = arith.constant 0 : i32
    return %c0_i32, %c0_i32_0, %c0_i32_1, %c0_i32_2 : i32, i32, i32, i32
  }
  func.func @transform_4(%arg0: i32, %arg1: i32) -> (i32, i32) {
    %c0_i32 = arith.constant 0 : i32
    %c0_i32_0 = arith.constant 0 : i32
    %c0_i32_1 = arith.constant 0 : i32
    return %c0_i32, %c0_i32_0 : i32, i32
  }
  func.func @transform_5(%arg0: i32, %arg1: i32) -> (i32, i32) {
    %c0_i32 = arith.constant 0 : i32
    %c0_i32_0 = arith.constant 0 : i32
    %c0_i32_1 = arith.constant 0 : i32
    return %c0_i32, %c0_i32_0 : i32, i32
  }
  func.func @transform_6(%arg0: i32, %arg1: i32) -> (i32, i32) {
    %c0_i32 = arith.constant 0 : i32
    %c0_i32_0 = arith.constant 0 : i32
    %c0_i32_1 = arith.constant 0 : i32
    return %c0_i32, %c0_i32_0 : i32, i32
  }
  func.func @transform_7(%arg0: i32, %arg1: i32) -> (i32, i32, i32) {
    %c0_i32 = arith.constant 0 : i32
    %c0_i32_0 = arith.constant 0 : i32
    return %arg0, %arg1, %c0_i32 : i32, i32, i32
  }
}

module attributes {stable_mosaic.version = 11 : i64} {
  func.func @_c1_branch_kernel(%arg0: i32, %arg1: i32, %arg2: memref<1x8x8x32xf32, #tpu.memory_space<vmem>>, %arg3: memref<1x1x8x32xf32, #tpu.memory_space<vmem>>, %arg4: memref<1x1x8x32xf32, #tpu.memory_space<vmem>>, %arg5: memref<3x3x32x128xbf16, #tpu.memory_space<vmem>>, %arg6: memref<1x128xf32, #tpu.memory_space<vmem>>, %arg7: memref<128x128xf32, #tpu.memory_space<vmem>>, %arg8: memref<1x128xf32, #tpu.memory_space<vmem>>, %arg9: memref<1x64x128xf32, #tpu.memory_space<vmem>>) attributes {dimension_semantics = [#tpu.dimension_semantics<parallel>, #tpu.dimension_semantics<parallel>], iteration_bounds = array<i64: 2, 1>, scalar_prefetch = 0 : i64, scratch_operands = 0 : i64, tpu.core_type = #tpu.core_type<tc>, window_params = [{transform_indices = @transform_0, window_bounds = array<i64: 1, 8, 8, 32>}, {transform_indices = @transform_1, window_bounds = array<i64: 1, 1, 8, 32>}, {transform_indices = @transform_2, window_bounds = array<i64: 1, 1, 8, 32>}, {pipeline_mode = #tpu.pipeline_mode<synchronous>, transform_indices = @transform_3, window_bounds = array<i64: 3, 3, 32, 128>}, {pipeline_mode = #tpu.pipeline_mode<synchronous>, transform_indices = @transform_4, window_bounds = array<i64: 1, 128>}, {pipeline_mode = #tpu.pipeline_mode<synchronous>, transform_indices = @transform_5, window_bounds = array<i64: 128, 128>}, {pipeline_mode = #tpu.pipeline_mode<synchronous>, transform_indices = @transform_6, window_bounds = array<i64: 1, 128>}, {transform_indices = @transform_7, window_bounds = array<i64: 1, 64, 128>}]} {
    %c0 = arith.constant 0 : index
    %c0_0 = arith.constant 0 : index
    %c0_1 = arith.constant 0 : index
    %c0_2 = arith.constant 0 : index
    %0 = vector.load %arg2[%c0, %c0_0, %c0_1, %c0_2] : memref<1x8x8x32xf32, #tpu.memory_space<vmem>>, vector<1x8x8x32xf32>
    %1 = vector.shape_cast %0 : vector<1x8x8x32xf32> to vector<8x8x32xf32>
    %c0_3 = arith.constant 0 : index
    %c0_4 = arith.constant 0 : index
    %c0_5 = arith.constant 0 : index
    %c0_6 = arith.constant 0 : index
    %2 = vector.load %arg3[%c0_3, %c0_4, %c0_5, %c0_6] : memref<1x1x8x32xf32, #tpu.memory_space<vmem>>, vector<1x1x8x32xf32>
    %3 = vector.shape_cast %2 : vector<1x1x8x32xf32> to vector<8x32xf32>
    %c0_7 = arith.constant 0 : index
    %c0_8 = arith.constant 0 : index
    %c0_9 = arith.constant 0 : index
    %c0_10 = arith.constant 0 : index
    %4 = vector.load %arg4[%c0_7, %c0_8, %c0_9, %c0_10] : memref<1x1x8x32xf32, #tpu.memory_space<vmem>>, vector<1x1x8x32xf32>
    %5 = vector.shape_cast %4 : vector<1x1x8x32xf32> to vector<8x32xf32>
    %c0_i32 = arith.constant 0 : i32
    %6 = arith.cmpi eq, %arg1, %c0_i32 : i32
    %cst = arith.constant 0.000000e+00 : f32
    %cst_11 = arith.constant 1.000000e+00 : f32
    %7 = arith.select %6, %cst, %cst_11 : f32
    %8 = vector.broadcast %7 : f32 to vector<8x32xf32>
    %9 = arith.mulf %3, %8 : vector<8x32xf32>
    %c0_i32_12 = arith.constant 0 : i32
    %10 = arith.cmpi eq, %arg1, %c0_i32_12 : i32
    %cst_13 = arith.constant 0.000000e+00 : f32
    %cst_14 = arith.constant 1.000000e+00 : f32
    %11 = arith.select %10, %cst_13, %cst_14 : f32
    %12 = vector.broadcast %11 : f32 to vector<8x32xf32>
    %13 = arith.mulf %5, %12 : vector<8x32xf32>
    %14 = vector.shape_cast %9 : vector<8x32xf32> to vector<1x8x32xf32>
    %15 = vector.shape_cast %13 : vector<8x32xf32> to vector<1x8x32xf32>
    %16 = tpu.concatenate %14, %1, %15 in 0 : vector<1x8x32xf32>, vector<8x8x32xf32>, vector<1x8x32xf32> -> vector<10x8x32xf32>
    %17 = vector.shape_cast %16 : vector<10x8x32xf32> to vector<80x32xf32>
    %18 = arith.truncf %17 : vector<80x32xf32> to vector<80x32xbf16>
    %cst_15 = arith.constant 0.000000e+00 : f32
    %19 = vector.broadcast %cst_15 : f32 to vector<64x128xf32>
    %cst_16 = arith.constant 0.000000e+00 : f32
    %20 = vector.broadcast %cst_16 : f32 to vector<64x128xf32>
    %cst_17 = arith.constant 0.000000e+00 : f32
    %21 = vector.broadcast %cst_17 : f32 to vector<64x128xf32>
    %22 = vector.extract_strided_slice %18 {offsets = [0, 0], sizes = [64, 32], strides = [1, 1]} : vector<80x32xbf16> to vector<64x32xbf16>
    %c0_18 = arith.constant 0 : index
    %c0_19 = arith.constant 0 : index
    %c0_20 = arith.constant 0 : index
    %c0_21 = arith.constant 0 : index
    %23 = vector.load %arg5[%c0_18, %c0_19, %c0_20, %c0_21] : memref<3x3x32x128xbf16, #tpu.memory_space<vmem>>, vector<1x1x32x128xbf16>
    %24 = vector.shape_cast %23 : vector<1x1x32x128xbf16> to vector<32x128xbf16>
    %cst_22 = arith.constant dense<0.000000e+00> : vector<64x128xf32>
    %25 = tpu.matmul %22, %24, %cst_22 {dimension_numbers = #tpu.dot_dimension_numbers<[1], [0], [0], [1], [0, 0, 1, 1], [], []>} : vector<64x32xbf16>, vector<32x128xbf16>, vector<64x128xf32> -> vector<64x128xf32>
    %26 = arith.addf %19, %25 : vector<64x128xf32>
    %c0_23 = arith.constant 0 : index
    %c1 = arith.constant 1 : index
    %c0_24 = arith.constant 0 : index
    %c0_25 = arith.constant 0 : index
    %27 = vector.load %arg5[%c0_23, %c1, %c0_24, %c0_25] : memref<3x3x32x128xbf16, #tpu.memory_space<vmem>>, vector<1x1x32x128xbf16>
    %28 = vector.shape_cast %27 : vector<1x1x32x128xbf16> to vector<32x128xbf16>
    %cst_26 = arith.constant dense<0.000000e+00> : vector<64x128xf32>
    %29 = tpu.matmul %22, %28, %cst_26 {dimension_numbers = #tpu.dot_dimension_numbers<[1], [0], [0], [1], [0, 0, 1, 1], [], []>} : vector<64x32xbf16>, vector<32x128xbf16>, vector<64x128xf32> -> vector<64x128xf32>
    %30 = arith.addf %20, %29 : vector<64x128xf32>
    %c0_27 = arith.constant 0 : index
    %c2 = arith.constant 2 : index
    %c0_28 = arith.constant 0 : index
    %c0_29 = arith.constant 0 : index
    %31 = vector.load %arg5[%c0_27, %c2, %c0_28, %c0_29] : memref<3x3x32x128xbf16, #tpu.memory_space<vmem>>, vector<1x1x32x128xbf16>
    %32 = vector.shape_cast %31 : vector<1x1x32x128xbf16> to vector<32x128xbf16>
    %cst_30 = arith.constant dense<0.000000e+00> : vector<64x128xf32>
    %33 = tpu.matmul %22, %32, %cst_30 {dimension_numbers = #tpu.dot_dimension_numbers<[1], [0], [0], [1], [0, 0, 1, 1], [], []>} : vector<64x32xbf16>, vector<32x128xbf16>, vector<64x128xf32> -> vector<64x128xf32>
    %34 = arith.addf %21, %33 : vector<64x128xf32>
    %35 = vector.extract_strided_slice %18 {offsets = [8, 0], sizes = [64, 32], strides = [1, 1]} : vector<80x32xbf16> to vector<64x32xbf16>
    %c1_31 = arith.constant 1 : index
    %c0_32 = arith.constant 0 : index
    %c0_33 = arith.constant 0 : index
    %c0_34 = arith.constant 0 : index
    %36 = vector.load %arg5[%c1_31, %c0_32, %c0_33, %c0_34] : memref<3x3x32x128xbf16, #tpu.memory_space<vmem>>, vector<1x1x32x128xbf16>
    %37 = vector.shape_cast %36 : vector<1x1x32x128xbf16> to vector<32x128xbf16>
    %cst_35 = arith.constant dense<0.000000e+00> : vector<64x128xf32>
    %38 = tpu.matmul %35, %37, %cst_35 {dimension_numbers = #tpu.dot_dimension_numbers<[1], [0], [0], [1], [0, 0, 1, 1], [], []>} : vector<64x32xbf16>, vector<32x128xbf16>, vector<64x128xf32> -> vector<64x128xf32>
    %39 = arith.addf %26, %38 : vector<64x128xf32>
    %c1_36 = arith.constant 1 : index
    %c1_37 = arith.constant 1 : index
    %c0_38 = arith.constant 0 : index
    %c0_39 = arith.constant 0 : index
    %40 = vector.load %arg5[%c1_36, %c1_37, %c0_38, %c0_39] : memref<3x3x32x128xbf16, #tpu.memory_space<vmem>>, vector<1x1x32x128xbf16>
    %41 = vector.shape_cast %40 : vector<1x1x32x128xbf16> to vector<32x128xbf16>
    %cst_40 = arith.constant dense<0.000000e+00> : vector<64x128xf32>
    %42 = tpu.matmul %35, %41, %cst_40 {dimension_numbers = #tpu.dot_dimension_numbers<[1], [0], [0], [1], [0, 0, 1, 1], [], []>} : vector<64x32xbf16>, vector<32x128xbf16>, vector<64x128xf32> -> vector<64x128xf32>
    %43 = arith.addf %30, %42 : vector<64x128xf32>
    %c1_41 = arith.constant 1 : index
    %c2_42 = arith.constant 2 : index
    %c0_43 = arith.constant 0 : index
    %c0_44 = arith.constant 0 : index
    %44 = vector.load %arg5[%c1_41, %c2_42, %c0_43, %c0_44] : memref<3x3x32x128xbf16, #tpu.memory_space<vmem>>, vector<1x1x32x128xbf16>
    %45 = vector.shape_cast %44 : vector<1x1x32x128xbf16> to vector<32x128xbf16>
    %cst_45 = arith.constant dense<0.000000e+00> : vector<64x128xf32>
    %46 = tpu.matmul %35, %45, %cst_45 {dimension_numbers = #tpu.dot_dimension_numbers<[1], [0], [0], [1], [0, 0, 1, 1], [], []>} : vector<64x32xbf16>, vector<32x128xbf16>, vector<64x128xf32> -> vector<64x128xf32>
    %47 = arith.addf %34, %46 : vector<64x128xf32>
    %48 = vector.extract_strided_slice %18 {offsets = [16, 0], sizes = [64, 32], strides = [1, 1]} : vector<80x32xbf16> to vector<64x32xbf16>
    %c2_46 = arith.constant 2 : index
    %c0_47 = arith.constant 0 : index
    %c0_48 = arith.constant 0 : index
    %c0_49 = arith.constant 0 : index
    %49 = vector.load %arg5[%c2_46, %c0_47, %c0_48, %c0_49] : memref<3x3x32x128xbf16, #tpu.memory_space<vmem>>, vector<1x1x32x128xbf16>
    %50 = vector.shape_cast %49 : vector<1x1x32x128xbf16> to vector<32x128xbf16>
    %cst_50 = arith.constant dense<0.000000e+00> : vector<64x128xf32>
    %51 = tpu.matmul %48, %50, %cst_50 {dimension_numbers = #tpu.dot_dimension_numbers<[1], [0], [0], [1], [0, 0, 1, 1], [], []>} : vector<64x32xbf16>, vector<32x128xbf16>, vector<64x128xf32> -> vector<64x128xf32>
    %52 = arith.addf %39, %51 : vector<64x128xf32>
    %c2_51 = arith.constant 2 : index
    %c1_52 = arith.constant 1 : index
    %c0_53 = arith.constant 0 : index
    %c0_54 = arith.constant 0 : index
    %53 = vector.load %arg5[%c2_51, %c1_52, %c0_53, %c0_54] : memref<3x3x32x128xbf16, #tpu.memory_space<vmem>>, vector<1x1x32x128xbf16>
    %54 = vector.shape_cast %53 : vector<1x1x32x128xbf16> to vector<32x128xbf16>
    %cst_55 = arith.constant dense<0.000000e+00> : vector<64x128xf32>
    %55 = tpu.matmul %48, %54, %cst_55 {dimension_numbers = #tpu.dot_dimension_numbers<[1], [0], [0], [1], [0, 0, 1, 1], [], []>} : vector<64x32xbf16>, vector<32x128xbf16>, vector<64x128xf32> -> vector<64x128xf32>
    %56 = arith.addf %43, %55 : vector<64x128xf32>
    %c2_56 = arith.constant 2 : index
    %c2_57 = arith.constant 2 : index
    %c0_58 = arith.constant 0 : index
    %c0_59 = arith.constant 0 : index
    %57 = vector.load %arg5[%c2_56, %c2_57, %c0_58, %c0_59] : memref<3x3x32x128xbf16, #tpu.memory_space<vmem>>, vector<1x1x32x128xbf16>
    %58 = vector.shape_cast %57 : vector<1x1x32x128xbf16> to vector<32x128xbf16>
    %cst_60 = arith.constant dense<0.000000e+00> : vector<64x128xf32>
    %59 = tpu.matmul %48, %58, %cst_60 {dimension_numbers = #tpu.dot_dimension_numbers<[1], [0], [0], [1], [0, 0, 1, 1], [], []>} : vector<64x32xbf16>, vector<32x128xbf16>, vector<64x128xf32> -> vector<64x128xf32>
    %60 = arith.addf %47, %59 : vector<64x128xf32>
    %61 = vector.shape_cast %52 : vector<64x128xf32> to vector<8x8x128xf32>
    %62 = vector.shape_cast %60 : vector<64x128xf32> to vector<8x8x128xf32>
    %cst_61 = arith.constant 0.000000e+00 : f32
    %63 = vector.broadcast %cst_61 : f32 to vector<8x1x128xf32>
    %64 = vector.extract_strided_slice %61 {offsets = [0, 0, 0], sizes = [8, 7, 128], strides = [1, 1, 1]} : vector<8x8x128xf32> to vector<8x7x128xf32>
    %65 = tpu.concatenate %63, %64 in 1 : vector<8x1x128xf32>, vector<8x7x128xf32> -> vector<8x8x128xf32>
    %66 = vector.extract_strided_slice %62 {offsets = [0, 1, 0], sizes = [8, 7, 128], strides = [1, 1, 1]} : vector<8x8x128xf32> to vector<8x7x128xf32>
    %67 = tpu.concatenate %66, %63 in 1 : vector<8x7x128xf32>, vector<8x1x128xf32> -> vector<8x8x128xf32>
    %68 = arith.addf %65, %67 : vector<8x8x128xf32>
    %69 = vector.shape_cast %68 : vector<8x8x128xf32> to vector<64x128xf32>
    %70 = arith.addf %56, %69 : vector<64x128xf32>
    %c0_62 = arith.constant 0 : index
    %c0_63 = arith.constant 0 : index
    %71 = vector.load %arg6[%c0_62, %c0_63] : memref<1x128xf32, #tpu.memory_space<vmem>>, vector<1x128xf32>
    %72 = vector.broadcast %71 : vector<1x128xf32> to vector<64x128xf32>
    %73 = arith.addf %70, %72 : vector<64x128xf32>
    %cst_64 = arith.constant 0.000000e+00 : f32
    %74 = vector.broadcast %cst_64 : f32 to vector<64x128xf32>
    %75 = arith.maximumf %73, %74 : vector<64x128xf32>
    %c0_65 = arith.constant 0 : index
    %c0_66 = arith.constant 0 : index
    %76 = vector.load %arg7[%c0_65, %c0_66] : memref<128x128xf32, #tpu.memory_space<vmem>>, vector<128x128xf32>
    %cst_67 = arith.constant dense<0.000000e+00> : vector<64x128xf32>
    %77 = tpu.matmul %75, %76, %cst_67 {dimension_numbers = #tpu.dot_dimension_numbers<[1], [0], [0], [1], [0, 0, 1, 1], [], []>} : vector<64x128xf32>, vector<128x128xf32>, vector<64x128xf32> -> vector<64x128xf32>
    %c0_68 = arith.constant 0 : index
    %c0_69 = arith.constant 0 : index
    %78 = vector.load %arg8[%c0_68, %c0_69] : memref<1x128xf32, #tpu.memory_space<vmem>>, vector<1x128xf32>
    %79 = vector.broadcast %78 : vector<1x128xf32> to vector<64x128xf32>
    %80 = arith.addf %77, %79 : vector<64x128xf32>
    %cst_70 = arith.constant dense<0xFF800000> : vector<64xf32>
    %81 = vector.multi_reduction <maximumf>, %80, %cst_70 [1] : vector<64x128xf32> to vector<64xf32>
    %82 = vector.shape_cast %81 : vector<64xf32> to vector<64x1xf32>
    %83 = vector.broadcast %82 : vector<64x1xf32> to vector<64x128xf32>
    %84 = arith.subf %80, %83 : vector<64x128xf32>
    %85 = math.exp %84 : vector<64x128xf32>
    %cst_71 = arith.constant dense<0.000000e+00> : vector<64xf32>
    %86 = vector.multi_reduction <add>, %85, %cst_71 [1] : vector<64x128xf32> to vector<64xf32>
    %87 = vector.shape_cast %86 : vector<64xf32> to vector<64x1xf32>
    %88 = math.log %87 : vector<64x1xf32>
    %89 = vector.broadcast %88 : vector<64x1xf32> to vector<64x128xf32>
    %90 = arith.subf %84, %89 : vector<64x128xf32>
    %91 = vector.shape_cast %90 : vector<64x128xf32> to vector<1x64x128xf32>
    %c0_72 = arith.constant 0 : index
    %c0_73 = arith.constant 0 : index
    %c0_74 = arith.constant 0 : index
    %92 = vector.load %arg9[%c0_72, %c0_73, %c0_74] : memref<1x64x128xf32, #tpu.memory_space<vmem>>, vector<1x64x128xf32>
    tpu.vector_store %arg9[%c0_72, %c0_73, %c0_74], %91 {strides = array<i32>} : memref<1x64x128xf32, #tpu.memory_space<vmem>>, vector<1x64x128xf32>,
    return
  }
  func.func @transform_0(%arg0: i32, %arg1: i32) -> (i32, i32, i32, i32) {
    %c0_i32 = arith.constant 0 : i32
    %c0_i32_0 = arith.constant 0 : i32
    %c0_i32_1 = arith.constant 0 : i32
    return %arg0, %arg1, %c0_i32, %c0_i32_0 : i32, i32, i32, i32
  }
  func.func @transform_1(%arg0: i32, %arg1: i32) -> (i32, i32, i32, i32) {
    %c8_i32 = arith.constant 8 : i32
    %0 = arith.muli %arg1, %c8_i32 : i32
    %c1_i32 = arith.constant 1 : i32
    %1 = arith.subi %0, %c1_i32 : i32
    %c0_i32 = arith.constant 0 : i32
    %2 = arith.maxsi %1, %c0_i32 : i32
    %c0_i32_0 = arith.constant 0 : i32
    %c0_i32_1 = arith.constant 0 : i32
    %c0_i32_2 = arith.constant 0 : i32
    return %arg0, %2, %c0_i32_0, %c0_i32_1 : i32, i32, i32, i32
  }
  func.func @transform_2(%arg0: i32, %arg1: i32) -> (i32, i32, i32, i32) {
    %c8_i32 = arith.constant 8 : i32
    %0 = arith.muli %arg1, %c8_i32 : i32
    %c8_i32_0 = arith.constant 8 : i32
    %1 = arith.addi %0, %c8_i32_0 : i32
    %c7_i32 = arith.constant 7 : i32
    %2 = arith.minsi %1, %c7_i32 : i32
    %c0_i32 = arith.constant 0 : i32
    %c0_i32_1 = arith.constant 0 : i32
    %c0_i32_2 = arith.constant 0 : i32
    return %arg0, %2, %c0_i32, %c0_i32_1 : i32, i32, i32, i32
  }
  func.func @transform_3(%arg0: i32, %arg1: i32) -> (i32, i32, i32, i32) {
    %c0_i32 = arith.constant 0 : i32
    %c0_i32_0 = arith.constant 0 : i32
    %c0_i32_1 = arith.constant 0 : i32
    %c0_i32_2 = arith.constant 0 : i32
    %c0_i32_3 = arith.constant 0 : i32
    return %c0_i32, %c0_i32_0, %c0_i32_1, %c0_i32_2 : i32, i32, i32, i32
  }
  func.func @transform_4(%arg0: i32, %arg1: i32) -> (i32, i32) {
    %c0_i32 = arith.constant 0 : i32
    %c0_i32_0 = arith.constant 0 : i32
    %c0_i32_1 = arith.constant 0 : i32
    return %c0_i32, %c0_i32_0 : i32, i32
  }
  func.func @transform_5(%arg0: i32, %arg1: i32) -> (i32, i32) {
    %c0_i32 = arith.constant 0 : i32
    %c0_i32_0 = arith.constant 0 : i32
    %c0_i32_1 = arith.constant 0 : i32
    return %c0_i32, %c0_i32_0 : i32, i32
  }
  func.func @transform_6(%arg0: i32, %arg1: i32) -> (i32, i32) {
    %c0_i32 = arith.constant 0 : i32
    %c0_i32_0 = arith.constant 0 : i32
    %c0_i32_1 = arith.constant 0 : i32
    return %c0_i32, %c0_i32_0 : i32, i32
  }
  func.func @transform_7(%arg0: i32, %arg1: i32) -> (i32, i32, i32) {
    %c0_i32 = arith.constant 0 : i32
    %c0_i32_0 = arith.constant 0 : i32
    return %arg0, %arg1, %c0_i32 : i32, i32, i32
  }
}

</mosaic_0001>

<bundles_post_ra>
// kernel: c1_deepsup_forward.3
= control target key start
LH: loop header
LB: loop body
LE: loop exit
PB: predicated region body
PF: predicated region fallthrough
CT: control target
= control target key end

     0   :  { %s2860_s24 = smov 0   ;;  %s2862_s25 = smov 0   ;;  %s3705_s0 = inlined_call_operand.vmem [shape: f32[2,16,16,16], index: 0, kind: input, shape index: {}, may-alias: {0,1,2}]   ;;  %s3706_s1 = inlined_call_operand.vmem [shape: f32[2,16,16,16], index: 1, kind: input, shape index: {}, may-alias: {0,1,2}]   ;;  %s3707_s2 = inlined_call_operand.vmem [shape: f32[2,16,16,16], index: 2, kind: input, shape index: {}, may-alias: {0,1,2}]   ;;  %s3708_s3 = inlined_call_operand.vmem [shape: bf16[3,3,16,128], index: 3, kind: input, shape index: {}]   ;;  %s3709_s4 = inlined_call_operand.vmem [shape: f32[1,128], index: 4, kind: input, shape index: {}]   ;;  %s3710_s5 = inlined_call_operand.vmem [shape: f32[128,128], index: 5, kind: input, shape index: {}]   ;;  %s3711_s6 = inlined_call_operand.vmem [shape: f32[1,128], index: 6, kind: input, shape index: {}]   ;;  %s3712_s7 = inlined_call_operand.vmem [shape: f32[2,256,128], index: 7, kind: output, shape index: {}]  }
   0x1   :  { %s2864_s26 = smov 0   ;;  %s2866_s27 = smov 0  }
   0x2   :  { %s2868_s28 = smov 0  }
   0x3 LB: > { %s26_s29 = sadd.s32 1, %s2810_s26  ;;  %s29_s30 = sadd.s32 1, %s2814_s27  ;;  %s2818_s28 = sphi %s2868_s28, %s17_s28   ;;  %s2814_s27 = sphi %s2866_s27, %s3772_s27   ;;  %s2810_s26 = sphi %s2864_s26, %s3771_s26   ;;  %s2806_s25 = sphi %s2862_s25, %s3770_s25   ;;  %s2802_s24 = sphi %s2860_s24, %s3769_s24  }
   0x4   : > { %p27_p0 = scmp.ge.s32.totalorder %s26_s29, 2  ;;  %p2208_p1 = scmp.ge.s32.totalorder %s2818_s28, 1 }
   0x5   : > { %p323_p2 = scmp.lt.s32.totalorder %s2818_s28, 5 }
   0x6   : > { %s3774_s29 = smov (%p27_p0, %s26_s29), 0  ;;  %s3776_s30 = smov (!%p27_p0, %s29_s30), %s2814_s27 }
   0x7   : > { %p324_p3 = pnand %p2208_p1, %p323_p2  ;;  %p31_p4 = scmp.ge.s32.totalorder %s3776_s30, 2 }
   0x9   : > { %s3778_s30 = smov (%p31_p4, %s3776_s30), 0  ;;  %327 = sbr.rel (%p324_p3) target bundleno = 909 (0x38d), region = 48 }
   0xe   : > { %v2707_v0 = vld [vmem:[%s3708_s3 + $0x18] sm:$0xff]   ;;  %s2896_s10 = sshll.u32 %s2802_s24, 3  ;;  %p391_p5 = scmp.lt.s32.totalorder %s2806_s25, 1  ;;  %v2708_v1 = vld [vmem:[%s3708_s3 + $0x20] sm:$0xff]   ;;  %v2711_v3 = vld [vmem:[%s3708_s3 + $0x8] sm:$0xff]   ;;  %vm503_vm0 = vcmask 130048  }
   0xf   : > { %p393_p6 = scmp.lt.s32.totalorder %s2896_s10, 15  ;;  %2449 = vmatprep.subr.bf16.mxu0 %v2707_v0  ;;  %v2709_v2 = vld [vmem:[%s3708_s3] sm:$0xff]   ;;  %s2214_s17 = sadd.s32 4294967295, %s2896_s10  ;;  %v2710_v13 = vld [vmem:[%s3708_s3 + $0x28] sm:$0xff]   ;;  %v2713_v26 = vld [vmem:[%s3708_s3 + $0x10] sm:$0xff]   ;;  %vm1534_vm1 = vcmask 1040384  }
  0x10   : > { %2450 = vmatpush3.bf16.msra.mxu0 %v2707_v0  ;;  %s3780_s25 = smov (!%p391_p5, %s2806_s25), 1  ;;  %2467 = vmatprep.subr.bf16.mxu1 %v2709_v2  ;;  %p403_p7 = scmp.gt.s32.totalorder %s2214_s17, 0  ;;  %v2712_v36 = vld [vmem:[%s3708_s3 + $0x30] sm:$0xff]   ;;  %v2715_v37 = vld [vmem:[%s3708_s3 + $0x38] sm:$0xff]   ;;  %v2714_v38 = vld [vmem:[%s3708_s3 + $0x40] sm:$0xff]   ;;  %vm1599_vm2 = vcmask 1046528  }
  0x11   : > { %s394_s15 = scalar_select %p393_p6, %s2896_s10, 15  ;;  %2485 = vmatprep.subr.bf16.mxu0 %v2708_v1  ;;  %2468 = vmatpush3.bf16.msra.mxu1 %v2709_v2  ;;  %v1734_v45 = vld [vmem:[%s3710_s5 + $0x78] sm:$0xff]  ;;  %v1733_v46 = vld [vmem:[%s3710_s5 + $0x70] sm:$0xff]  ;;  %v1732_v47 = vld [vmem:[%s3710_s5 + $0x68] sm:$0xff] }
  0x12   : > { %s2906_s16 = sshll.u32 %s3780_s25, 5  ;;  %p2215_p8 = scmp.lt.s32.totalorder %s2214_s17, 15  ;;  %2503 = vmatprep.subr.bf16.mxu1 %v2711_v3  ;;  %v1731_v48 = vld [vmem:[%s3710_s5 + $0x60] sm:$0xff]  ;;  %v1730_v50 = vld [vmem:[%s3710_s5 + $0x58] sm:$0xff]  ;;  %v1729_v52 = vld [vmem:[%s3710_s5 + $0x50] sm:$0xff] }
  0x13   : > { %s2210_s20 = sshll.u32 %s394_s15, 1  ;;  %p466_p9 = scmp.eq.s32.totalorder %s2802_s24, 0  ;;  %v1728_v54 = vld [vmem:[%s3710_s5 + $0x48] sm:$0xff]  ;;  %v1727_v56 = vld [vmem:[%s3710_s5 + $0x40] sm:$0xff]  ;;  %v1726_v58 = vld [vmem:[%s3710_s5 + $0x38] sm:$0xff] }
  0x14   : > { %s397_s21 = sadd.s32 %s2906_s16, %s2210_s20  ;;  %s419_s13 = sadd.s32 8, %s2896_s10  ;;  %v1725_v62 = vld [vmem:[%s3710_s5 + $0x30] sm:$0xff]  ;;  %v1724_v2 = vld [vmem:[%s3710_s5 + $0x28] sm:$0xff] }
  0x15   : > { %s2212_s22 = sshll.u32 %s397_s21, 3  ;;  %p420_p10 = scmp.lt.s32.totalorder %s419_s13, 15 }
  0x16   : > { %s2917_s25 = scalar_lea.vmem %s3705_s0, %s2212_s22  ;;  %p471_p11 = scmp.eq.s32.totalorder %s2802_s24, 1 }
  0x17   : > { %v446_v4 = vld [vmem:[%s2917_s25] sm:$0xff]  ;;  %v447_v5 = vld [vmem:[%s2917_s25 + $0x8] sm:$0xff]  ;;  %v448_v6 = vld [vmem:[%s2917_s25 + $0x10] sm:$0xff]  ;;  %s404_s9 = scalar_select %p403_p7, %s2214_s17, 0 }
  0x18   : > { %v2922_v7 = vpack.c.bf16 %v447_v5, %v446_v4  ;;  %v449_v8 = vld [vmem:[%s2917_s25 + $0x18] sm:$0xff]  ;;  %s467_s11 = scalar_select %p466_p9, 0.0, 1.0  ;;  %v450_v9 = vld [vmem:[%s2917_s25 + $0x20] sm:$0xff]  ;;  %v451_v10 = vld [vmem:[%s2917_s25 + $0x28] sm:$0xff] }
  0x19   : > { %v2927_v11 = vpack.c.bf16 %v449_v8, %v448_v6  ;;  %s3782_s9 = smov (!%p2215_p8, %s404_s9), 15  ;;  %v2930_v12 = vpack.c.bf16 %v451_v10, %v450_v9  ;;  %v452_v14 = vld [vmem:[%s2917_s25 + $0x30] sm:$0xff]  ;;  %v453_v15 = vld [vmem:[%s2917_s25 + $0x38] sm:$0xff]  ;;  %v454_v17 = vld [vmem:[%s2917_s25 + $0x40] sm:$0xff]  ;;  %s3784_s13 = smov (!%p420_p10, %s419_s13), 15 }
  0x1a   : > { %2451 = vmatprep.mubr.msk.bf16.mxu0 %vm503_vm0, %v2922_v7  ;;  %s2220_s14 = sshll.u32 %s3782_s9, 1  ;;  %v468_v16 = vstv %s467_s11  ;;  %v455_v18 = vld [vmem:[%s2917_s25 + $0x48] sm:$0xff]  ;;  %v2949_v21 = vpack.c.bf16 %v453_v15, %v452_v14  ;;  %v456_v27 = vld [vmem:[%s2917_s25 + $0x50] sm:$0xff]  ;;  %v457_v28 = vld [vmem:[%s2917_s25 + $0x58] sm:$0xff]  ;;  %s3786_s13 = smov (!%p420_p10, %s3784_s13), 15 }
  0x1b   : > { %2452 = vmatmul.mubr.msk.bf16.vlgmr.msra.gmra.mxu0 %vm503_vm0, %v2927_v11  ;;  %s411_s15 = sadd.s32 %s2220_s14, %s2906_s16  ;;  %v2951_v24 = vpack.c.bf16 %v455_v18, %v454_v17  ;;  %v458_v29 = vld [vmem:[%s2917_s25 + $0x60] sm:$0xff]  ;;  %v459_v30 = vld [vmem:[%s2917_s25 + $0x68] sm:$0xff]  ;;  %v2969_v31 = vpack.c.bf16 %v457_v28, %v456_v27  ;;  %v460_v33 = vld [vmem:[%s2917_s25 + $0x70] sm:$0xff]  ;;  %s2227_s10 = sshll.u32 %s3786_s13, 1 }
  0x1c   : > { %2486 = vmatpush3.bf16.msra.mxu0 %v2708_v1  ;;  %2455 = vmatprep.mubr.msk.bf16.mxu0 %vm503_vm0, %v2930_v12  ;;  %s2222_s17 = sshll.u32 %s411_s15, 3  ;;  %v2971_v32 = vpack.c.bf16 %v459_v30, %v458_v29  ;;  %v461_v34 = vld [vmem:[%s2917_s25 + $0x78] sm:$0xff]  ;;  %s428_s14 = sadd.s32 %s2227_s10, %s2906_s16  ;;  %v1723_v6 = vld [vmem:[%s3710_s5 + $0x20] sm:$0xff]  ;;  %v1721_v14 = vld [vmem:[%s3710_s5 + $0x10] sm:$0xff] }
  0x1d   : > { %2521 = vmatprep.subr.bf16.mxu0 %v2710_v13  ;;  %s413_s20 = scalar_lea.vmem %s3706_s1, %s2222_s17  ;;  %v2983_v35 = vpack.c.bf16 %v461_v34, %v460_v33  ;;  %s2229_s15 = sshll.u32 %s428_s14, 3  ;;  %v1722_v10 = vld [vmem:[%s3710_s5 + $0x18] sm:$0xff]  ;;  %v1720_v18 = vld [vmem:[%s3710_s5 + $0x8] sm:$0xff] }
  0x1e   : > { %v462_v19 = vld [vmem:[%s413_s20] sm:$0xff]  ;;  %v463_v20 = vld [vmem:[%s413_s20 + $0x8] sm:$0xff]  ;;  %s472_s17 = scalar_select %p471_p11, 0.0, 1.0 }
  0x1f   : > { %v469_v22 = vmul.f32 %v468_v16, %v462_v19  ;;  %v470_v23 = vmul.f32 %v468_v16, %v463_v20  ;;  %s430_s20 = scalar_lea.vmem %s3707_s2, %s2229_s15  ;;  %s2230_s25 = sshll.u32 %s2802_s24, 4 }
  0x20   : > { %v464_v39 = vld [vmem:[%s430_s20] sm:$0xff]  ;;  %v465_v40 = vld [vmem:[%s430_s20 + $0x8] sm:$0xff]  ;;  %v473_v41 = vstv %s472_s17  ;;  %p438_p12 = scmp.lt.s32.totalorder %s2230_s25, 31 }
  0x21   : > { %v476_v25 = vpack.c.bf16 %v470_v23, %v469_v22  ;;  %v474_v42 = vmul.f32 %v473_v41, %v464_v39  ;;  %v475_v43 = vmul.f32 %v473_v41, %v465_v40 }
  0x22   : > { %s3788_s25 = smov (!%p438_p12, %s2230_s25), 31 }
  0x23   : > { %2456 = vmatmul.mubr.msk.bf16.gmra.mxu0 %vm503_vm0, %v2949_v21  ;;  %2469 = vmatprep.mubr.msk.bf16.mxu1 %vm503_vm0, %v476_v25  ;;  %v485_v44 = vpack.c.bf16 %v475_v43, %v474_v42  ;;  %s441_s9 = sadd.s32 %s2906_s16, %s3788_s25 }
  0x24   : > { %2459 = vmatprep.mubr.msk.bf16.mxu0 %vm503_vm0, %v2951_v24  ;;  %2470 = vmatmul.mubr.msk.bf16.vlgmr.msra.gmra.mxu1 %vm503_vm0, %v2922_v7  ;;  %s2232_s11 = sshll.u32 %s441_s9, 3 }
  0x25   : > { %2473 = vmatprep.mubr.msk.bf16.mxu1 %vm503_vm0, %v2927_v11  ;;  %2504 = vmatpush3.bf16.msra.mxu1 %v2711_v3  ;;  %s3656_s13 = scalar_lea.vmem %s3712_s7, %s2232_s11 }
  0x26   : > { %2539 = vmatprep.subr.bf16.mxu1 %v2713_v26 }
  0x2b   : > { %2460 = vmatmul.mubr.msk.bf16.gmra.mxu0 %vm503_vm0, %v2969_v31 }
  0x2c   : > { %2463 = vmatprep.mubr.msk.bf16.mxu0 %vm503_vm0, %v2971_v32  ;;  %2474 = vmatmul.mubr.msk.bf16.gmra.mxu1 %vm503_vm0, %v2930_v12 }
  0x2d   : > { %2477 = vmatprep.mubr.msk.bf16.mxu1 %vm503_vm0, %v2949_v21 }
  0x33   : > { %2464 = vmatmul.mubr.msk.bf16.gmra.mxu0 %vm503_vm0, %v2983_v35 }
  0x34   : > { %2487 = vmatprep.mubr.msk.bf16.mxu0 %vm503_vm0, %v2922_v7  ;;  %2478 = vmatmul.mubr.msk.bf16.gmra.mxu1 %vm503_vm0, %v2951_v24 }
  0x35   : > { %2481 = vmatprep.mubr.msk.bf16.mxu1 %vm503_vm0, %v2969_v31 }
  0x3b   : > { %2488 = vmatmul.mubr.msk.bf16.vlgmr.msra.gmra.mxu0 %vm503_vm0, %v2927_v11 }
  0x3c   : > { %2522 = vmatpush3.bf16.msra.mxu0 %v2710_v13  ;;  %2491 = vmatprep.mubr.msk.bf16.mxu0 %vm503_vm0, %v2930_v12 }
  0x3d   : > { %2482 = vmatmul.mubr.msk.bf16.gmra.mxu1 %vm503_vm0, %v2971_v32  ;;  %2557 = vmatprep.subr.bf16.mxu0 %v2712_v36 }
  0x3e   : > { %2505 = vmatprep.mubr.msk.bf16.mxu1 %vm503_vm0, %v476_v25 }
  0x43   : > { %2492 = vmatmul.mubr.msk.bf16.gmra.mxu0 %vm503_vm0, %v2949_v21 }
  0x44   : > { %2495 = vmatprep.mubr.msk.bf16.mxu0 %vm503_vm0, %v2951_v24 }
  0x45   : > { %2506 = vmatmul.mubr.msk.bf16.vlgmr.msra.gmra.mxu1 %vm503_vm0, %v2922_v7 }
  0x46   : > { %2509 = vmatprep.mubr.msk.bf16.mxu1 %vm503_vm0, %v2927_v11  ;;  %2540 = vmatpush3.bf16.msra.mxu1 %v2713_v26 }
  0x47   : > { %2575 = vmatprep.subr.bf16.mxu1 %v2715_v37 }
  0x4b   : > { %2496 = vmatmul.mubr.msk.bf16.gmra.mxu0 %vm503_vm0, %v2969_v31 }
  0x4c   : > { %2499 = vmatprep.mubr.msk.bf16.mxu0 %vm503_vm0, %v2971_v32 }
  0x4d   : > { %2510 = vmatmul.mubr.msk.bf16.gmra.mxu1 %vm503_vm0, %v2930_v12 }
  0x4e   : > { %2513 = vmatprep.mubr.msk.bf16.mxu1 %vm503_vm0, %v2949_v21 }
  0x53   : > { %2500 = vmatmul.mubr.msk.bf16.gmra.mxu0 %vm503_vm0, %v2983_v35 }
  0x54   : > { %2523 = vmatprep.mubr.msk.bf16.mxu0 %vm503_vm0, %v2922_v7 }
  0x55   : > { %2514 = vmatmul.mubr.msk.bf16.gmra.mxu1 %vm503_vm0, %v2951_v24 }
  0x56   : > { %2517 = vmatprep.mubr.msk.bf16.mxu1 %vm503_vm0, %v2969_v31 }
  0x5b   : > { %2524 = vmatmul.mubr.msk.bf16.vlgmr.msra.gmra.mxu0 %vm503_vm0, %v2927_v11 }
  0x5c   : > { %2558 = vmatpush3.bf16.msra.mxu0 %v2712_v36  ;;  %2527 = vmatprep.mubr.msk.bf16.mxu0 %vm503_vm0, %v2930_v12 }
  0x5d   : > { %2518 = vmatmul.mubr.msk.bf16.gmra.mxu1 %vm503_vm0, %v2971_v32  ;;  %2593 = vmatprep.subr.bf16.mxu0 %v2714_v38 }
  0x5e   : > { %2541 = vmatprep.mubr.msk.bf16.mxu1 %vm503_vm0, %v476_v25 }
  0x63   : > { %2528 = vmatmul.mubr.msk.bf16.gmra.mxu0 %vm503_vm0, %v2949_v21 }
  0x64   : > { %2531 = vmatprep.mubr.msk.bf16.mxu0 %vm503_vm0, %v2951_v24 }
  0x65   : > { %2542 = vmatmul.mubr.msk.bf16.vlgmr.msra.gmra.mxu1 %vm503_vm0, %v2922_v7 }
  0x66   : > { %2545 = vmatprep.mubr.msk.bf16.mxu1 %vm503_vm0, %v2927_v11  ;;  %2576 = vmatpush3.bf16.msra.mxu1 %v2715_v37 }
  0x67   : > { %2611 = vmatprep.subr.mxu1 %v1734_v45 }
  0x6b   : > { %2532 = vmatmul.mubr.msk.bf16.gmra.mxu0 %vm503_vm0, %v2969_v31 }
  0x6c   : > { %2535 = vmatprep.mubr.msk.bf16.mxu0 %vm503_vm0, %v2971_v32 }
  0x6d   : > { %2546 = vmatmul.mubr.msk.bf16.gmra.mxu1 %vm503_vm0, %v2930_v12 }
  0x6e   : > { %2549 = vmatprep.mubr.msk.bf16.mxu1 %vm503_vm0, %v2949_v21 }
  0x73   : > { %2536 = vmatmul.mubr.msk.bf16.gmra.mxu0 %vm503_vm0, %v2983_v35 }
  0x74   : > { %2559 = vmatprep.mubr.msk.bf16.mxu0 %vm503_vm0, %v2927_v11 }
  0x75   : > { %2550 = vmatmul.mubr.msk.bf16.gmra.mxu1 %vm503_vm0, %v2951_v24 }
  0x76   : > { %2553 = vmatprep.mubr.msk.bf16.mxu1 %vm503_vm0, %v2969_v31 }
  0x7b   : > { %2560 = vmatmul.mubr.msk.bf16.vlgmr.msra.gmra.mxu0 %vm503_vm0, %v2930_v12 }
  0x7c   : > { %2594 = vmatpush3.bf16.msra.mxu0 %v2714_v38  ;;  %2563 = vmatprep.mubr.msk.bf16.mxu0 %vm503_vm0, %v2949_v21 }
  0x7d   : > { %2554 = vmatmul.mubr.msk.bf16.gmra.mxu1 %vm503_vm0, %v2971_v32 }
  0x7e   : > { %2577 = vmatprep.mubr.msk.bf16.mxu1 %vm503_vm0, %v2927_v11 }
  0x83   : > { %2564 = vmatmul.mubr.msk.bf16.gmra.mxu0 %vm503_vm0, %v2951_v24 }
  0x84   : > { %2567 = vmatprep.mubr.msk.bf16.mxu0 %vm503_vm0, %v2969_v31 }
  0x85   : > { %2578 = vmatmul.mubr.msk.bf16.vlgmr.msra.gmra.mxu1 %vm503_vm0, %v2930_v12 }
  0x86   : > { %2581 = vmatprep.mubr.msk.bf16.mxu1 %vm503_vm0, %v2949_v21  ;;  %2612 = vmatpush3.msra.mxu1 %v1734_v45 }
  0x87   : > { %2613 = vmatprep.subr.mxu1 %v1733_v46 }
  0x88   : > { %2614 = vmatpush3.msra.mxu1 %v1733_v46 }
  0x89   : > { %2615 = vmatprep.subr.mxu1 %v1732_v47 }
  0x8a   : > { %2616 = vmatpush3.msra.mxu1 %v1732_v47 }
  0x8b   : > { %2568 = vmatmul.mubr.msk.bf16.gmra.mxu0 %vm503_vm0, %v2971_v32  ;;  %2617 = vmatprep.subr.mxu1 %v1731_v48 }
  0x8c   : > { %2571 = vmatprep.mubr.msk.bf16.mxu0 %vm503_vm0, %v2983_v35  ;;  %2618 = vmatpush3.msra.mxu1 %v1731_v48 }
  0x8d   : > { %2582 = vmatmul.mubr.msk.bf16.gmra.mxu1 %vm503_vm0, %v2951_v24  ;;  %2619 = vmatprep.subr.mxu1 %v1730_v50 }
  0x8e   : > { %2585 = vmatprep.mubr.msk.bf16.mxu1 %vm503_vm0, %v2969_v31  ;;  %2620 = vmatpush3.msra.mxu1 %v1730_v50 }
  0x8f   : > { %2621 = vmatprep.subr.mxu1 %v1729_v52 }
  0x90   : > { %2622 = vmatpush3.msra.mxu1 %v1729_v52 }
  0x91   : > { %2623 = vmatprep.subr.mxu1 %v1728_v54 }
  0x92   : > { %2624 = vmatpush3.msra.mxu1 %v1728_v54 }
  0x93   : > { %2572 = vmatmul.mubr.msk.bf16.gmra.mxu0 %vm503_vm0, %v485_v44  ;;  %2625 = vmatprep.subr.mxu1 %v1727_v56 }
  0x94   : > { %2595 = vmatprep.mubr.msk.bf16.mxu0 %vm503_vm0, %v2927_v11  ;;  %2626 = vmatpush3.msra.mxu1 %v1727_v56 }
  0x95   : > { %2586 = vmatmul.mubr.msk.bf16.gmra.mxu1 %vm503_vm0, %v2971_v32  ;;  %2627 = vmatprep.subr.mxu1 %v1726_v58 }
  0x96   : > { %2589 = vmatprep.mubr.msk.bf16.mxu1 %vm503_vm0, %v2983_v35  ;;  %2628 = vmatpush3.msra.mxu1 %v1726_v58 }
  0x97   : > { %2629 = vmatprep.subr.mxu1 %v1725_v62 }
  0x98   : > { %2630 = vmatpush3.msra.mxu1 %v1725_v62 }
  0x99   : > { %2631 = vmatprep.subr.mxu1 %v1724_v2 }
  0x9a   : > { %2632 = vmatpush3.msra.mxu1 %v1724_v2 }
  0x9b   : > { %2596 = vmatmul.mubr.msk.bf16.vlgmr.msra.gmra.mxu0 %vm503_vm0, %v2930_v12  ;;  %2633 = vmatprep.subr.mxu1 %v1723_v6 }
  0x9c   : > { %2599 = vmatprep.mubr.msk.bf16.mxu0 %vm503_vm0, %v2949_v21  ;;  %2634 = vmatpush3.msra.mxu1 %v1723_v6  ;;  %v1719_v21 = vld [vmem:[%s3710_s5] sm:$0xff] }
  0x9d   : > { %2590 = vmatmul.mubr.msk.bf16.gmra.mxu1 %vm503_vm0, %v485_v44  ;;  %2635 = vmatprep.subr.mxu1 %v1722_v10 }
  0x9e   : > { %2636 = vmatpush3.msra.mxu1 %v1722_v10 }
  0x9f   : > { %2637 = vmatprep.subr.mxu1 %v1721_v14 }
  0xa0   : > { %2638 = vmatpush3.msra.mxu1 %v1721_v14 }
  0xa1   : > { %2639 = vmatprep.subr.mxu1 %v1720_v18 }
  0xa2   : > { %2640 = vmatpush3.msra.mxu1 %v1720_v18 }
  0xa3   : > { %2600 = vmatmul.mubr.msk.bf16.gmra.mxu0 %vm503_vm0, %v2951_v24  ;;  %2641 = vmatprep.subr.mxu1 %v1719_v21 }
  0xa4   : > { %2603 = vmatprep.mubr.msk.bf16.mxu0 %vm503_vm0, %v2969_v31  ;;  %2642 = vmatpush3.msra.mxu1 %v1719_v21 }
  0xab   : > { %2604 = vmatmul.mubr.msk.bf16.gmra.mxu0 %vm503_vm0, %v2971_v32 }
  0xac   : > { %2607 = vmatprep.mubr.msk.bf16.mxu0 %vm503_vm0, %v2983_v35 }
  0xb3   : > { %2608 = vmatmul.mubr.msk.bf16.gmra.mxu0 %vm503_vm0, %v485_v44 }
  0xdb   : > { %v2453_v49 = vpop.f32.mrf.mxu0 }
  0xdd   : > { %v562_v51 = vpop.f32.mrf.mxu0 }
  0xdf   : > { %v2454_v53 = vpop.f32.mrf.mxu0 }
  0xe1   : > { %v565_v55 = vpop.f32.mrf.mxu0 }
  0xe3   : > { %v2457_v57 = vpop.f32.mrf.mxu0 }
  0xe4   : > { %v2471_v59 = vpop.f32.mrf.mxu1 }
  0xe5   : > { %v578_v60 = vpop.f32.mrf.mxu0  ;;  %v3142_v61 = vadd.f32 %v2471_v59, %v2453_v49 }
  0xe6   : > { %v668_v63 = vpop.f32.mrf.mxu1 }
  0xe7   : > { %v2458_v0 = vpop.f32.mrf.mxu0  ;;  %v3147_v1 = vadd.f32 %v668_v63, %v562_v51 }
  0xe8   : > { %v2472_v3 = vpop.f32.mrf.mxu1 }
  0xe9   : > { %v581_v4 = vpop.f32.mrf.mxu0  ;;  %v3152_v5 = vadd.f32 %v2472_v3, %v2454_v53 }
  0xea   : > { %v671_v7 = vpop.f32.mrf.mxu1 }
  0xeb   : > { %v2461_v8 = vpop.f32.mrf.mxu0  ;;  %v3157_v9 = vadd.f32 %v671_v7, %v565_v55 }
  0xec   : > { %v2475_v11 = vpop.f32.mrf.mxu1 }
  0xed   : > { %v594_v12 = vpop.f32.mrf.mxu0  ;;  %v3162_v13 = vadd.f32 %v2475_v11, %v2457_v57 }
  0xee   : > { %v684_v15 = vpop.f32.mrf.mxu1 }
  0xef   : > { %v2462_v16 = vpop.f32.mrf.mxu0  ;;  %v3167_v17 = vadd.f32 %v684_v15, %v578_v60 }
  0xf0   : > { %v2476_v19 = vpop.f32.mrf.mxu1 }
  0xf1   : > { %v597_v20 = vpop.f32.mrf.mxu0  ;;  %v3175_v22 = vadd.f32 %v2476_v19, %v2458_v0 }
  0xf2   : > { %v687_v23 = vpop.f32.mrf.mxu1 }
  0xf3   : > { %v2465_v24 = vpop.f32.mrf.mxu0  ;;  %v3177_v25 = vadd.f32 %v687_v23, %v581_v4 }
  0xf4   : > { %v2479_v26 = vpop.f32.mrf.mxu1 }
  0xf5   : > { %v610_v27 = vpop.f32.mrf.mxu0  ;;  %v3179_v28 = vadd.f32 %v2479_v26, %v2461_v8 }
  0xf6   : > { %v700_v29 = vpop.f32.mrf.mxu1 }
  0xf7   : > { %v2466_v30 = vpop.f32.mrf.mxu0  ;;  %v3181_v31 = vadd.f32 %v700_v29, %v594_v12 }
  0xf8   : > { %v2480_v32 = vpop.f32.mrf.mxu1 }
  0xf9   : > { %v613_v33 = vpop.f32.mrf.mxu0  ;;  %v3183_v34 = vadd.f32 %v2480_v32, %v2462_v16 }
  0xfa   : > { %v703_v35 = vpop.f32.mrf.mxu1 }
  0xfb   : > { %v2489_v36 = vpop.f32.mrf.mxu0  ;;  %v3185_v37 = vadd.f32 %v703_v35, %v597_v20 }
  0xfd   : > { %v2483_v38 = vpop.f32.mrf.mxu1  ;;  %v774_v39 = vpop.f32.mrf.mxu0 }
  0xfe   : > { %v3187_v40 = vadd.f32 %v2483_v38, %v2465_v24 }
  0xff   : > { %v716_v41 = vpop.f32.mrf.mxu1  ;;  %v2490_v42 = vpop.f32.mrf.mxu0 }
 0x100   : > { %v3189_v43 = vadd.f32 %v716_v41, %v610_v27 }
 0x101   : > { %v2484_v44 = vpop.f32.mrf.mxu1  ;;  %v3191_v45 = vpop.f32.mrf.mxu0 }
 0x102   : > { %v3193_v46 = vadd.f32 %v2484_v44, %v2466_v30 }
 0x103   : > { %v719_v47 = vpop.f32.mrf.mxu1  ;;  %v2493_v48 = vpop.f32.mrf.mxu0 }
 0x104   : > { %v3195_v49 = vadd.f32 %v719_v47, %v613_v33 }
 0x105   : > { %v2507_v50 = vpop.f32.mrf.mxu1  ;;  %v790_v51 = vpop.f32.mrf.mxu0 }
 0x106   : > { %v3197_v52 = vadd.f32 %v2507_v50, %v2489_v36 }
 0x107   : > { %v877_v53 = vpop.f32.mrf.mxu1  ;;  %v2494_v54 = vpop.f32.mrf.mxu0 }
 0x108   : > { %3718 = vst [vmem:[#allocation2_spill] sm:$0xff] %v3197_v52  ;;  %v3199_v55 = vadd.f32 %v877_v53, %v774_v39 }
 0x109   : > { %v2508_v56 = vpop.f32.mrf.mxu1  ;;  %v3201_v57 = vpop.f32.mrf.mxu0 }
 0x10a   : > { %3719 = vst [vmem:[#allocation3_spill] sm:$0xff] %v3199_v55  ;;  %v3203_v58 = vadd.f32 %v2508_v56, %v2490_v42 }
 0x10b   : > { %v3205_v59 = vpop.f32.mrf.mxu1  ;;  %v2497_v60 = vpop.f32.mrf.mxu0 }
 0x10c   : > { %3720 = vst [vmem:[#allocation4_spill] sm:$0xff] %v3203_v58 }
 0x10d   : > { %v2511_v62 = vpop.f32.mrf.mxu1  ;;  %v806_v63 = vpop.f32.mrf.mxu0 }
 0x10e   : > { %v3207_v0 = vadd.f32 %v2511_v62, %v2493_v48 }
 0x10f   : > { %v893_v2 = vpop.f32.mrf.mxu1  ;;  %v2498_v3 = vpop.f32.mrf.mxu0 }
 0x110   : > { %3721 = vst [vmem:[#allocation5_spill] sm:$0xff] %v3207_v0  ;;  %v3209_v4 = vadd.f32 %v893_v2, %v790_v51 }
 0x111   : > { %v2512_v6 = vpop.f32.mrf.mxu1  ;;  %v3211_v7 = vpop.f32.mrf.mxu0 }
 0x112   : > { %3722 = vst [vmem:[#allocation6_spill] sm:$0xff] %v3209_v4  ;;  %v3213_v8 = vadd.f32 %v2512_v6, %v2494_v54 }
 0x113   : > { %v3215_v10 = vpop.f32.mrf.mxu1  ;;  %v2501_v11 = vpop.f32.mrf.mxu0 }
 0x114   : > { %3723 = vst [vmem:[#allocation7_spill] sm:$0xff] %v3213_v8 }
 0x115   : > { %v2515_v12 = vpop.f32.mrf.mxu1  ;;  %v822_v14 = vpop.f32.mrf.mxu0 }
 0x116   : > { %v3217_v15 = vadd.f32 %v2515_v12, %v2497_v60 }
 0x117   : > { %v909_v16 = vpop.f32.mrf.mxu1  ;;  %v2502_v18 = vpop.f32.mrf.mxu0 }
 0x118   : > { %3724 = vst [vmem:[#allocation8_spill] sm:$0xff] %v3217_v15  ;;  %v3219_v19 = vadd.f32 %v909_v16, %v806_v63 }
 0x119   : > { %v2516_v20 = vpop.f32.mrf.mxu1  ;;  %v3221_v21 = vpop.f32.mrf.mxu0 }
 0x11a   : > { %3725 = vst [vmem:[#allocation9_spill] sm:$0xff] %v3219_v19  ;;  %v3223_v23 = vadd.f32 %v2516_v20, %v2498_v3 }
 0x11b   : > { %v3225_v24 = vpop.f32.mrf.mxu1  ;;  %v3227_v26 = vpop.f32.mrf.mxu0 }
 0x11c   : > { %3726 = vst [vmem:[#allocation10_spill] sm:$0xff] %v3223_v23 }
 0x11d   : > { %v2519_v27 = vpop.f32.mrf.mxu1  ;;  %v3229_v29 = vpop.f32.mrf.mxu0 }
 0x11e   : > { %v3231_v30 = vadd.f32 %v2519_v27, %v2501_v11 }
 0x11f   : > { %v925_v32 = vpop.f32.mrf.mxu1  ;;  %v3233_v33 = vpop.f32.mrf.mxu0 }
 0x120   : > { %3727 = vst [vmem:[#allocation11_spill] sm:$0xff] %v3231_v30  ;;  %v3235_v35 = vadd.f32 %v925_v32, %v822_v14 }
 0x121   : > { %v2520_v36 = vpop.f32.mrf.mxu1  ;;  %v3237_v38 = vpop.f32.mrf.mxu0 }
 0x122   : > { %3728 = vst [vmem:[#allocation12_spill] sm:$0xff] %v3235_v35  ;;  %v3239_v39 = vadd.f32 %v2520_v36, %v2502_v18 }
 0x123   : > { %v3241_v41 = vpop.f32.mrf.mxu1  ;;  %v3243_v42 = vpop.f32.mrf.mxu0 }
 0x124   : > { %3729 = vst [vmem:[#allocation13_spill] sm:$0xff] %v3239_v39 }
 0x125   : > { %v3245_v44 = vpop.f32.mrf.mxu1  ;;  %v3247_v47 = vpop.f32.mrf.mxu0 }
 0x127   : > { %v3249_v48 = vpop.f32.mrf.mxu1  ;;  %v3251_v50 = vpop.f32.mrf.mxu0 }
 0x129   : > { %v3253_v51 = vpop.f32.mrf.mxu1  ;;  %v3255_v53 = vpop.f32.mrf.mxu0 }
 0x12b   : > { %v3257_v54 = vpop.f32.mrf.mxu1  ;;  %v3259_v56 = vpop.f32.mrf.mxu0 }
 0x12d   : > { %v3261_v60 = vpop.f32.mrf.mxu1  ;;  %v3263_v62 = vpop.f32.mrf.mxu0 }
 0x12f   : > { %v3265_v63 = vpop.f32.mrf.mxu1  ;;  %v3267_v2 = vpop.f32.mrf.mxu0 }
 0x131   : > { %v3269_v3 = vpop.f32.mrf.mxu1  ;;  %v3271_v6 = vpop.f32.mrf.mxu0 }
 0x133   : > { %v3273_v11 = vpop.f32.mrf.mxu1  ;;  %v3275_v12 = vpop.f32.mrf.mxu0 }
 0x135   : > { %v3277_v14 = vpop.f32.mrf.mxu1  ;;  %v3279_v16 = vpop.f32.mrf.mxu0 }
 0x137   : > { %v3281_v18 = vpop.f32.mrf.mxu1  ;;  %v3283_v20 = vpop.f32.mrf.mxu0 }
 0x138   : > { %3730 = vst [vmem:[#allocation14_spill] sm:$0xff] %v3283_v20 }
 0x139   : > { %v3285_v27 = vpop.f32.mrf.mxu1  ;;  %v3287_v32 = vpop.f32.mrf.mxu0 }
 0x13a   : > { %3731 = vst [vmem:[#allocation15_spill] sm:$0xff] %v3287_v32 }
 0x13b   : > { %v3289_v36 = vpop.f32.mrf.mxu1  ;;  %v2561_v39 = vpop.f32.mrf.mxu0 }
 0x13c   : > { %v3294_v23 = vadd.f32 %v2561_v39, %v3142_v61 }
 0x13d   : > { %v3291_v35 = vpop.f32.mrf.mxu1  ;;  %v1195_v30 = vpop.f32.mrf.mxu0 }
 0x13e   : > { %v3299_v8 = vadd.f32 %v1195_v30, %v3147_v1  ;;  %v3713_v55 = vrot.slane %v3294_v23, 7 }
 0x13f   : > { %v3296_v19 = vpop.f32.mrf.mxu1  ;;  %v2562_v15 = vpop.f32.mrf.mxu0 }
 0x140   : > { %3732 = vst [vmem:[#allocation16_spill] sm:$0xff] %v3296_v19  ;;  %v1261_v4 = vadd.f32 %v2562_v15, %v3152_v5  ;;  %v3714_v39 = vrot.slane %v3299_v8, 7 }
 0x141   : > { %v3302_v0 = vpop.f32.mrf.mxu1  ;;  %v1198_v58 = vpop.f32.mrf.mxu0 }
 0x142   : > { %v1539_v52 = vrot.slane %v1261_v4, 7  ;;  %v1259_v32 = vadd.f32 %v1198_v58, %v3157_v9 }
 0x143   : > { %v3306_v20 = vpop.f32.mrf.mxu1  ;;  %v2565_v61 = vpop.f32.mrf.mxu0 }
 0x144   : > { %3733 = vst [vmem:[#allocation17_spill] sm:$0xff] %v3306_v20  ;;  %v1536_v19 = vrot.slane %v1259_v32, 7  ;;  %v3312_v1 = vsel %vm1534_vm1, %v3713_v55, %v1539_v52  ;;  %v3317_v30 = vadd.f32 %v2565_v61, %v3162_v13 }
 0x145   : > { %3734 = vst [vmem:[#allocation18_spill] sm:$0xff] %v3312_v1  ;;  %v3314_v5 = vpop.f32.mrf.mxu1  ;;  %v1211_v15 = vpop.f32.mrf.mxu0 }
 0x146   : > { %3735 = vst [vmem:[#allocation19_spill] sm:$0xff] %v3314_v5  ;;  %v3322_v9 = vsel %vm1534_vm1, %v3714_v39, %v1536_v19  ;;  %v3327_v32 = vadd.f32 %v1211_v15, %v3167_v17  ;;  %v3715_v5 = vrot.slane %v3317_v30, 7 }
 0x147   : > { %3736 = vst [vmem:[#allocation20_spill] sm:$0xff] %v3322_v9  ;;  %v3324_v58 = vpop.f32.mrf.mxu1  ;;  %v2566_v4 = vpop.f32.mrf.mxu0 }
 0x148   : > { %v1265_v52 = vadd.f32 %v2566_v4, %v3175_v22  ;;  %v3716_v39 = vrot.slane %v3327_v32, 7 }
 0x149   : > { %v3330_v55 = vpop.f32.mrf.mxu1  ;;  %v1214_v1 = vpop.f32.mrf.mxu0 }
 0x14a   : > { %v1545_v13 = vrot.slane %v1265_v52, 7  ;;  %v1263_v61 = vadd.f32 %v1214_v1, %v3177_v25 }
 0x14b   : > { %v3334_v20 = vpop.f32.mrf.mxu1  ;;  %v2569_v19 = vpop.f32.mrf.mxu0 }
 0x14c   : > { %3737 = vst [vmem:[#allocation21_spill] sm:$0xff] %v3334_v20  ;;  %v1542_v9 = vrot.slane %v1263_v61, 7  ;;  %v3340_v17 = vsel %vm1534_vm1, %v3715_v5, %v1545_v13  ;;  %v3345_v4 = vadd.f32 %v2569_v19, %v3179_v28 }
 0x14d   : > { %3738 = vst [vmem:[#allocation22_spill] sm:$0xff] %v3340_v17  ;;  %v3342_v22 = vpop.f32.mrf.mxu1  ;;  %v1227_v15 = vpop.f32.mrf.mxu0 }
 0x14e   : > { %3739 = vst [vmem:[#allocation23_spill] sm:$0xff] %v3342_v22  ;;  %v3350_v25 = vsel %vm1534_vm1, %v3716_v39, %v1542_v9  ;;  %v3355_v61 = vadd.f32 %v1227_v15, %v3181_v31  ;;  %v3717_v17 = vrot.slane %v3345_v4, 7 }
 0x14f   : > { %3740 = vst [vmem:[#allocation24_spill] sm:$0xff] %v3350_v25  ;;  %v2570_v1 = vpop.f32.mrf.mxu0  ;;  %v3352_v52 = vpop.f32.mrf.mxu1 }
 0x150   : > { %v1269_v13 = vadd.f32 %v2570_v1, %v3183_v34  ;;  %v1547_v9 = vrot.slane %v3355_v61, 7 }
 0x151   : > { %v1230_v5 = vpop.f32.mrf.mxu0  ;;  %v3360_v20 = vpop.f32.mrf.mxu1 }
 0x152   : > { %v1551_v22 = vrot.slane %v1269_v13, 7  ;;  %v1267_v28 = vadd.f32 %v1230_v5, %v3185_v37 }
 0x153   : > { %v2573_v19 = vpop.f32.mrf.mxu0  ;;  %v3376_v5 = vpop.f32.mrf.mxu1 }
 0x154   : > { %v1548_v39 = vrot.slane %v1267_v28, 7  ;;  %v3366_v25 = vsel %vm1534_vm1, %v3717_v17, %v1551_v22  ;;  %v3369_v34 = vadd.f32 %v2573_v19, %v3187_v40  ;;  %v881_v22 = vadd.f32 %v3205_v59, %v3191_v45 }
 0x155   : > { %v1243_v31 = vpop.f32.mrf.mxu0  ;;  %v1095_v45 = vadd.f32 %v3245_v44, %v3227_v26  ;;  %v1111_v26 = vadd.f32 %v3261_v60, %v3243_v42  ;;  %v1114_v44 = vadd.f32 %v3269_v3, %v3251_v50  ;;  %v3433_v42 = vadd.f32 %v3281_v18, %v3263_v62  ;;  %v3746_v18 = vld [vmem:[#allocation17_spill] sm:$0xff] }
 0x156   : > { %v3374_v15 = vsel %vm1534_vm1, %v1547_v9, %v1548_v39  ;;  %v3379_v1 = vadd.f32 %v1243_v31, %v3189_v43  ;;  %v1556_v40 = vrot.slane %v3369_v34, 7  ;;  %v3388_v39 = vadd.f32 %v3215_v10, %v3201_v57 }
 0x157   : > { %v2574_v37 = vpop.f32.mrf.mxu0  ;;  %v3392_v43 = vadd.f32 %v3225_v24, %v3211_v7  ;;  %v1087_v31 = vadd.f32 %v3249_v48, %v3229_v29  ;;  %v1090_v24 = vadd.f32 %v3257_v54, %v3237_v38  ;;  %v1103_v29 = vadd.f32 %v3265_v63, %v3247_v47  ;;  %v3741_v54 = vld [vmem:[#allocation16_spill] sm:$0xff] }
 0x158   : > { %v1273_v13 = vadd.f32 %v2574_v37, %v3193_v46  ;;  %v3396_v46 = vadd.f32 %v3241_v41, %v3221_v21  ;;  %v1553_v57 = vrot.slane %v3379_v1, 7  ;;  %v1098_v21 = vadd.f32 %v3253_v51, %v3233_v33  ;;  %v3748_v37 = vld [vmem:[#allocation19_spill] sm:$0xff] }
 0x159   : > { %v1246_v28 = vpop.f32.mrf.mxu0  ;;  %v1106_v48 = vadd.f32 %v3273_v11, %v3255_v53  ;;  %v3429_v38 = vadd.f32 %v3277_v14, %v3259_v56  ;;  %v3437_v47 = vadd.f32 %v3285_v27, %v3267_v2  ;;  %v3441_v50 = vadd.f32 %v3289_v36, %v3271_v6  ;;  %v3743_v11 = vld [vmem:[#allocation14_spill] sm:$0xff] }
 0x15a   : > { %v1557_v19 = vrot.slane %v1273_v13, 7  ;;  %v1271_v17 = vadd.f32 %v1246_v28, %v3195_v49  ;;  %v3402_v49 = vpop.f32.mrf.mxu1  ;;  %v3445_v53 = vadd.f32 %v3291_v35, %v3275_v12  ;;  %v3449_v56 = vadd.f32 %v3741_v54, %v3279_v16  ;;  %v3745_v12 = vld [vmem:[#allocation15_spill] sm:$0xff]  ;;  %v3747_v36 = vld [vmem:[#allocation2_spill] sm:$0xff] }
 0x15b   : > { %v2597_v59 = vpop.f32.mrf.mxu0  ;;  %v3742_v2 = vrot.slane %v3294_v23, 7  ;;  %v3458_v6 = vadd.f32 %v3302_v0, %v3743_v11  ;;  %v3744_v14 = vrot.slane %v3299_v8, 7  ;;  %v3465_v16 = vadd.f32 %v3746_v18, %v3745_v12  ;;  %v3754_v11 = vld [vmem:[#allocation5_spill] sm:$0xff] }
 0x15c   : > { %v1554_v10 = vrot.slane %v1271_v17, 7  ;;  %v3408_v7 = vsel %vm1534_vm1, %v1556_v40, %v1557_v19  ;;  %v1504_v17 = vadd.f32 %v2597_v59, %v1095_v45  ;;  %v3451_v60 = vpop.f32.mrf.mxu1  ;;  %v1382_v13 = vadd.f32 %v3748_v37, %v3747_v36  ;;  %v3749_v45 = vld [vmem:[#allocation3_spill] sm:$0xff]  ;;  %v3757_v36 = vld [vmem:[#allocation6_spill] sm:$0xff] }
 0x15d   : > { %v1439_v41 = vpop.f32.mrf.mxu0  ;;  %v1576_v3 = vsel %vm1534_vm1, 0.0, %v3742_v2  ;;  %v1575_v35 = vsel %vm1534_vm1, 0.0, %v3744_v14  ;;  %v1380_v59 = vadd.f32 %v3324_v58, %v3749_v45  ;;  %v3750_v0 = vrot.slane %v3317_v30, 7  ;;  %v3753_v2 = vld [vmem:[#allocation21_spill] sm:$0xff]  ;;  %v3755_v14 = vld [vmem:[#allocation23_spill] sm:$0xff] }
 0x15e   : > { %v3425_v33 = vsel %vm1534_vm1, %v1553_v57, %v1554_v10  ;;  %v1502_v62 = vadd.f32 %v1439_v41, %v1087_v31  ;;  %v1603_v28 = vrot.slane %v1504_v17, 1  ;;  %v3751_v31 = vld [vmem:[#allocation4_spill] sm:$0xff]  ;;  %v3479_v54 = vpop.f32.mrf.mxu1  ;;  %v1381_v30 = vadd.f32 %v3753_v2, %v881_v22 }
 0x15f   : > { %v2598_v51 = vpop.f32.mrf.mxu0  ;;  %v1578_v8 = vsel %vm1534_vm1, 0.0, %v3750_v0  ;;  %v1383_v10 = vadd.f32 %v3330_v55, %v3751_v31  ;;  %v1386_v12 = vadd.f32 %v3755_v14, %v3754_v11  ;;  %v3756_v55 = vld [vmem:[#allocation18_spill] sm:$0xff]  ;;  %v1384_v37 = vadd.f32 %v3352_v52, %v3757_v36 }
 0x160   : > { %v1505_v63 = vadd.f32 %v2598_v51, %v1098_v21  ;;  %v3752_v21 = vrot.slane %v3327_v32, 7  ;;  %v1600_v17 = vrot.slane %v1502_v62, 1  ;;  %v3759_v2 = vrot.slane %v3345_v4, 7  ;;  %v3499_v52 = vpop.f32.mrf.mxu1 }
 0x161   : > { %v1442_v27 = vpop.f32.mrf.mxu0  ;;  %v1385_v4 = vadd.f32 %v3376_v5, %v3388_v39 }
 0x162   : > { %v1604_v23 = vrot.slane %v1505_v63, 1  ;;  %v1503_v19 = vadd.f32 %v1442_v27, %v1090_v24  ;;  %v1577_v41 = vsel %vm1534_vm1, 0.0, %v3752_v21 }
 0x163   : > { %v2601_v51 = vpop.f32.mrf.mxu0 }
 0x164   : > { %v1605_v24 = vsel %vm1599_vm2, %v1603_v28, %v1604_v23  ;;  %v1641_v63 = vsel %vm1599_vm2, %v1604_v23, 0.0  ;;  %v1601_v58 = vrot.slane %v1503_v19, 1  ;;  %v1508_v28 = vadd.f32 %v2601_v51, %v1111_v26  ;;  %v3758_v19 = vld [vmem:[#allocation20_spill] sm:$0xff]  ;;  %v3504_v26 = vld [vmem:[%s3709_s4] ss:$0 sm:$0xff] }
 0x165   : > { %v1650_v18 = vadd.f32 %v1605_v24, %v1576_v3  ;;  %v1651_v27 = vadd.f32 %v1641_v63, %v3756_v55  ;;  %v1455_v32 = vpop.f32.mrf.mxu0  ;;  %v3495_v3 = vsel %vm1534_vm1, 0.0, %v3759_v2  ;;  %v3760_v24 = vld [vmem:[#allocation7_spill] sm:$0xff] }
 0x166   : > { %v1602_v45 = vsel %vm1599_vm2, %v1600_v17, %v1601_v58  ;;  %v1640_v62 = vsel %vm1599_vm2, %v1601_v58, 0.0  ;;  %v1506_v22 = vadd.f32 %v1455_v32, %v1103_v29  ;;  %v1387_v63 = vadd.f32 %v3360_v20, %v3760_v24  ;;  %v3761_v58 = vld [vmem:[#allocation8_spill] sm:$0xff]  ;;  %v2591_v32 = vpop.f32.mrf.mxu1 }
 0x167   : > { %v1667_v0 = vadd.f32 %v1651_v27, %v1383_v10  ;;  %v1648_v23 = vadd.f32 %v1602_v45, %v1575_v35  ;;  %v1649_v31 = vadd.f32 %v1640_v62, %v3758_v19  ;;  %v2602_v21 = vpop.f32.mrf.mxu0  ;;  %v1666_v10 = vadd.f32 %v1650_v18, %v1382_v13  ;;  %v3762_v45 = vld [vmem:[#allocation22_spill] sm:$0xff]  ;;  %v3763_v24 = vld [vmem:[#allocation24_spill] sm:$0xff] }
 0x168   : > { %v1509_v35 = vadd.f32 %v2602_v21, %v1114_v44  ;;  %v3509_v29 = vsel %vm1534_vm1, 0.0, %v1547_v9  ;;  %v3515_v11 = vadd.f32 %v3402_v49, %v3761_v58  ;;  %v1609_v14 = vrot.slane %v1508_v28, 1 }
 0x169   : > { %v1665_v51 = vadd.f32 %v1649_v31, %v1381_v30  ;;  %v1458_v17 = vpop.f32.mrf.mxu0  ;;  %v1664_v20 = vadd.f32 %v1648_v23, %v1380_v59  ;;  %v1606_v13 = vrot.slane %v1506_v22, 1  ;;  %v1689_v18 = vadd.f32 %v3504_v26, %v1666_v10 }
 0x16a   : > { %v1610_v55 = vrot.slane %v1509_v35, 1  ;;  %v1507_v27 = vadd.f32 %v1458_v17, %v1106_v48  ;;  %v1690_v49 = vadd.f32 %v3504_v26, %v1667_v0  ;;  %v3534_v17 = vsel %vm1534_vm1, 0.0, %v1556_v40 }
 0x16b   : > { %v1688_v44 = vadd.f32 %v3504_v26, %v1665_v51  ;;  %v2605_v61 = vpop.f32.mrf.mxu0  ;;  %v1687_v9 = vadd.f32 %v3504_v26, %v1664_v20  ;;  %v1705_v0 = vmax.f32 %v1689_v18, 0.0  ;;  %v1365_v20 = vpop.f32.mrf.mxu1  ;;  %v3542_v58 = vsel %vm1534_vm1, 0.0, %v1553_v57 }
 0x16c   : > { %v1611_v5 = vsel %vm1599_vm2, %v1609_v14, %v1610_v55  ;;  %v1643_v39 = vsel %vm1599_vm2, %v1610_v55, 0.0  ;;  %v1607_v59 = vrot.slane %v1507_v27, 1  ;;  %v1512_v31 = vadd.f32 %v2605_v61, %v3429_v38 }
 0x16d   : > { %v1704_v30 = vmax.f32 %v1688_v44, 0.0  ;;  %v1654_v36 = vadd.f32 %v1611_v5, %v1578_v8  ;;  %v1655_v48 = vadd.f32 %v1643_v39, %v3762_v45  ;;  %v1471_v62 = vpop.f32.mrf.mxu0  ;;  %v1703_v28 = vmax.f32 %v1687_v9, 0.0  ;;  %v3764_v8 = vld [vmem:[#allocation9_spill] sm:$0xff]  ;;  %v2592_v61 = vpop.f32.mrf.mxu1 }
 0x16e   : > { %v1608_v23 = vsel %vm1599_vm2, %v1606_v13, %v1607_v59  ;;  %v1642_v19 = vsel %vm1599_vm2, %v1607_v59, 0.0  ;;  %v1510_v22 = vadd.f32 %v1471_v62, %v3433_v42  ;;  %v1388_v51 = vadd.f32 %v3451_v60, %v3764_v8  ;;  %v3768_v8 = vld [vmem:[#allocation13_spill] sm:$0xff] }
 0x16f   : > { %v1671_v21 = vadd.f32 %v1655_v48, %v1387_v63  ;;  %v1652_v2 = vadd.f32 %v1608_v23, %v1577_v41  ;;  %v1653_v35 = vadd.f32 %v1642_v19, %v3763_v24  ;;  %v2606_v10 = vpop.f32.mrf.mxu0  ;;  %2643 = vmatprep.mubr.f32.mxu1 %v1703_v28  ;;  %v1670_v42 = vadd.f32 %v1654_v36, %v1386_v12  ;;  %v3765_v63 = vld [vmem:[#allocation10_spill] sm:$0xff]  ;;  %v3766_v23 = vld [vmem:[#allocation11_spill] sm:$0xff] }
 0x170   : > { %v1513_v38 = vadd.f32 %v2606_v10, %v3437_v47  ;;  %2644 = vmatmul.mubr.f32.vlgmr.msra.gmra.mxu1 %v1704_v30  ;;  %v1391_v41 = vadd.f32 %v3479_v54, %v3765_v63  ;;  %v1615_v55 = vrot.slane %v1512_v31, 1  ;;  %v1706_v44 = vmax.f32 %v1690_v49, 0.0  ;;  %v1368_v31 = vpop.f32.mrf.mxu1 }
 0x171   : > { %v1669_v14 = vadd.f32 %v1653_v35, %v1385_v4  ;;  %v1474_v60 = vpop.f32.mrf.mxu0  ;;  %2646 = vmatprep.mubr.f32.mxu1 %v1705_v0  ;;  %v1668_v34 = vadd.f32 %v1652_v2, %v1384_v37  ;;  %v1612_v47 = vrot.slane %v1510_v22, 1  ;;  %v1693_v1 = vadd.f32 %v3504_v26, %v1670_v42 }
 0x172   : > { %v1616_v40 = vrot.slane %v1513_v38, 1  ;;  %v1511_v27 = vadd.f32 %v1474_v60, %v3441_v50  ;;  %v1694_v37 = vadd.f32 %v3504_v26, %v1671_v21  ;;  %v1389_v49 = vadd.f32 %v3499_v52, %v3392_v43  ;;  %v3767_v21 = vld [vmem:[#allocation12_spill] sm:$0xff] }
 0x173   : > { %v2609_v13 = vpop.f32.mrf.mxu0  ;;  %v1691_v12 = vadd.f32 %v3504_v26, %v1668_v34  ;;  %v1692_v54 = vadd.f32 %v3504_v26, %v1669_v14  ;;  %v1394_v19 = vadd.f32 %v2591_v32, %v3766_v23 }
 0x174   : > { %v1617_v57 = vsel %vm1599_vm2, %v1615_v55, %v1616_v40  ;;  %v1645_v4 = vsel %vm1599_vm2, %v1616_v40, 0.0  ;;  %v1613_v9 = vrot.slane %v1511_v27, 1  ;;  %2647 = vmatmul.mubr.f32.gmra.mxu1 %v1706_v44  ;;  %v1516_v45 = vadd.f32 %v2609_v13, %v3445_v53 }
 0x175   : > { %v1658_v50 = vadd.f32 %v1617_v57, %v3495_v3  ;;  %v1659_v18 = vadd.f32 %v1645_v4, %v3366_v25  ;;  %v1487_v5 = vpop.f32.mrf.mxu0  ;;  %v1707_v39 = vmax.f32 %v1691_v12, 0.0  ;;  %v1708_v59 = vmax.f32 %v1692_v54, 0.0 }
 0x176   : > { %v1614_v30 = vsel %vm1599_vm2, %v1612_v47, %v1613_v9  ;;  %v1644_v36 = vsel %vm1599_vm2, %v1613_v9, 0.0  ;;  %v1709_v25 = vmax.f32 %v1693_v1, 0.0  ;;  %v1514_v22 = vadd.f32 %v1487_v5, %v3449_v56 }
 0x177   : > { %v1675_v48 = vadd.f32 %v1659_v18, %v1391_v41  ;;  %v1656_v62 = vadd.f32 %v1614_v30, %v3509_v29  ;;  %v1657_v28 = vadd.f32 %v1644_v36, %v3374_v15  ;;  %v2610_v3 = vpop.f32.mrf.mxu0  ;;  %2649 = vmatprep.mubr.f32.mxu1 %v1707_v39  ;;  %v1674_v52 = vadd.f32 %v1658_v50, %v3515_v11 }
 0x178   : > { %v1517_v43 = vadd.f32 %v2610_v3, %v3458_v6  ;;  %2650 = vmatmul.mubr.f32.gmra.mxu1 %v1708_v59  ;;  %v1392_v53 = vadd.f32 %v1365_v20, %v3767_v21  ;;  %v1710_v29 = vmax.f32 %v1694_v37, 0.0  ;;  %v1621_v35 = vrot.slane %v1516_v45, 1  ;;  %v2331_v37 = vld [vmem:[%s3711_s6] ss:$0 sm:$0xff] }
 0x179   : > { %v1673_v2 = vadd.f32 %v1657_v28, %v1389_v49  ;;  %v1490_v24 = vpop.f32.mrf.mxu0  ;;  %2652 = vmatprep.mubr.f32.mxu1 %v1709_v25  ;;  %v1672_v15 = vadd.f32 %v1656_v62, %v1388_v51  ;;  %v1697_v32 = vadd.f32 %v3504_v26, %v1674_v52  ;;  %v1395_v56 = vadd.f32 %v2592_v61, %v3768_v8 }
 0x17a   : > { %v1622_v10 = vrot.slane %v1517_v43, 1  ;;  %v1515_v0 = vadd.f32 %v1490_v24, %v3465_v16  ;;  %v1393_v6 = vadd.f32 %v1368_v31, %v3396_v46  ;;  %v1618_v20 = vrot.slane %v1514_v22, 1 }
 0x17b   : > { %v1695_v38 = vadd.f32 %v3504_v26, %v1672_v15  ;;  %v1696_v11 = vadd.f32 %v3504_v26, %v1673_v2  ;;  %v1713_v55 = vmax.f32 %v1697_v32, 0.0  ;;  %v1698_v40 = vadd.f32 %v3504_v26, %v1675_v48 }
 0x17c   : > { %v1623_v42 = vsel %vm1599_vm2, %v1621_v35, %v1622_v10  ;;  %v1647_v63 = vsel %vm1599_vm2, %v1622_v10, 0.0  ;;  %v1619_v51 = vrot.slane %v1515_v0, 1  ;;  %2653 = vmatmul.mubr.f32.gmra.mxu1 %v1710_v29 }
 0x17d   : > { %v1662_v41 = vadd.f32 %v1623_v42, %v3534_v17  ;;  %v1663_v16 = vadd.f32 %v1647_v63, %v3408_v7  ;;  %v1711_v14 = vmax.f32 %v1695_v38, 0.0  ;;  %v1712_v60 = vmax.f32 %v1696_v11, 0.0 }
 0x17e   : > { %v1620_v34 = vsel %vm1599_vm2, %v1618_v20, %v1619_v51  ;;  %v1646_v46 = vsel %vm1599_vm2, %v1619_v51, 0.0  ;;  %v1714_v12 = vmax.f32 %v1698_v40, 0.0 }
 0x17f   : > { %v1679_v27 = vadd.f32 %v1663_v16, %v1395_v56  ;;  %v1660_v44 = vadd.f32 %v1620_v34, %v3542_v58  ;;  %v1661_v47 = vadd.f32 %v1646_v46, %v3425_v33  ;;  %2655 = vmatprep.mubr.f32.mxu1 %v1711_v14  ;;  %v1678_v13 = vadd.f32 %v1662_v41, %v1394_v19 }
 0x180   : > { %2656 = vmatmul.mubr.f32.gmra.mxu1 %v1712_v60 }
 0x181   : > { %v1677_v17 = vadd.f32 %v1661_v47, %v1393_v6  ;;  %2658 = vmatprep.mubr.f32.mxu1 %v1713_v55  ;;  %v1676_v7 = vadd.f32 %v1660_v44, %v1392_v53  ;;  %v1701_v61 = vadd.f32 %v3504_v26, %v1678_v13  ;;  %v1702_v58 = vadd.f32 %v3504_v26, %v1679_v27 }
 0x183   : > { %v1699_v54 = vadd.f32 %v3504_v26, %v1676_v7  ;;  %v1700_v1 = vadd.f32 %v3504_v26, %v1677_v17  ;;  %v1717_v33 = vmax.f32 %v1701_v61, 0.0  ;;  %v1718_v9 = vmax.f32 %v1702_v58, 0.0 }
 0x184   : > { %2659 = vmatmul.mubr.f32.gmra.mxu1 %v1714_v12 }
 0x185   : > { %v1715_v57 = vmax.f32 %v1699_v54, 0.0  ;;  %v1716_v4 = vmax.f32 %v1700_v1, 0.0 }
 0x187   : > { %2661 = vmatprep.mubr.f32.mxu1 %v1715_v57 }
 0x188   : > { %2662 = vmatmul.mubr.f32.gmra.mxu1 %v1716_v4 }
 0x189   : > { %2664 = vmatprep.mubr.f32.mxu1 %v1717_v33 }
 0x18c   : > { %2665 = vmatmul.mubr.f32.gmra.mxu1 %v1718_v9 }
 0x230   : > { %v2645_v50 = vpop.f32.mrf.mxu1 }
 0x231   : > { %v1814_v18 = vadd.f32 %v2645_v50, %v2331_v37 }
 0x232   : > { %v1808_v5 = vpop.f32.mrf.mxu1 }
 0x233   : > { %1889 = vmax.xlane.f32.xlu0 %v1814_v18  ;;  %v1809_v59 = vadd.f32 %v2331_v37, %v1808_v5 }
 0x234   : > { %v2648_v39 = vpop.f32.mrf.mxu1 }
 0x235   : > { %v1824_v49 = vadd.f32 %v2648_v39, %v2331_v37 }
 0x236   : > { %v1818_v30 = vpop.f32.mrf.mxu1 }
 0x237   : > { %1893 = vmax.xlane.f32.xlu1 %v1824_v49  ;;  %1887 = vmax.xlane.f32.xlu0 %v1809_v59  ;;  %v1819_v36 = vadd.f32 %v2331_v37, %v1818_v30 }
 0x238   : > { %v2651_v26 = vpop.f32.mrf.mxu1 }
 0x239   : > { %v1834_v28 = vadd.f32 %v2651_v26, %v2331_v37 }
 0x23a   : > { %v1828_v45 = vpop.f32.mrf.mxu1 }
 0x23b   : > { %v1829_v48 = vadd.f32 %v2331_v37, %v1828_v45  ;;  %1891 = vmax.xlane.f32.xlu1 %v1819_v36 }
 0x23c   : > { %v2654_v62 = vpop.f32.mrf.mxu1 }
 0x23d   : > { %1895 = vmax.xlane.f32.xlu0 %v1829_v48  ;;  %v1844_v19 = vadd.f32 %v2654_v62, %v2331_v37 }
 0x23e   : > { %v1838_v3 = vpop.f32.mrf.mxu1 }
 0x23f   : > { %v1839_v25 = vadd.f32 %v2331_v37, %v1838_v3  ;;  %1897 = vmax.xlane.f32.xlu1 %v1834_v28 }
 0x240   : > { %v2657_v23 = vpop.f32.mrf.mxu1 }
 0x241   : > { %1899 = vmax.xlane.f32.xlu0 %v1839_v25  ;;  %v1854_v52 = vadd.f32 %v2657_v23, %v2331_v37 }
 0x242   : > { %v1848_v31 = vpop.f32.mrf.mxu1 }
 0x243   : > { %v1849_v22 = vadd.f32 %v2331_v37, %v1848_v31  ;;  %1901 = vmax.xlane.f32.xlu1 %v1844_v19 }
 0x244   : > { %v2660_v43 = vpop.f32.mrf.mxu1 }
 0x245   : > { %1903 = vmax.xlane.f32.xlu0 %v1849_v22  ;;  %v1864_v24 = vadd.f32 %v2660_v43, %v2331_v37 }
 0x246   : > { %v1858_v21 = vpop.f32.mrf.mxu1 }
 0x247   : > { %v1859_v53 = vadd.f32 %v2331_v37, %v1858_v21  ;;  %1905 = vmax.xlane.f32.xlu1 %v1854_v52 }
 0x248   : > { %v2663_v2 = vpop.f32.mrf.mxu1 }
 0x249   : > { %1907 = vmax.xlane.f32.xlu0 %v1859_v53  ;;  %v3589_v10 = vadd.f32 %v2663_v2, %v2331_v37 }
 0x24a   : > { %v1868_v29 = vpop.f32.mrf.mxu1 }
 0x24b   : > { %v3587_v15 = vadd.f32 %v2331_v37, %v1868_v29  ;;  %1909 = vmax.xlane.f32.xlu1 %v1864_v24 }
 0x24c   : > { %v2666_v35 = vpop.f32.mrf.mxu1 }
 0x24d   : > { %1911 = vmax.xlane.f32.xlu0 %v3587_v15  ;;  %v3595_v8 = vadd.f32 %v2666_v35, %v2331_v37 }
 0x24e   : > { %v1878_v0 = vpop.f32.mrf.mxu1 }
 0x24f   : > { %v3592_v32 = vadd.f32 %v2331_v37, %v1878_v0  ;;  %1913 = vmax.xlane.f32.xlu1 %v3589_v10 }
 0x251   : > { %1915 = vmax.xlane.f32.xlu0 %v3592_v32 }
 0x253   : > { %1917 = vmax.xlane.f32.xlu1 %v3595_v8 }
 0x2bc   : > { %v1890_v56 = vpop.xlane.xlu0 %1889 }
 0x2bd   : > { %v3599_v6 = vsub.f32 %v1814_v18, %v1890_v56 }
 0x2bf   : > { %v1937_v38 = vmul.f32 1.442695, %v3599_v6 }
 0x2c0   : > { %v1894_v11 = vpop.xlane.xlu1 %1893  ;;  %v1888_v20 = vpop.xlane.xlu0 %1887 }
 0x2c1   : > { %2716 = vpow2.f32 %v1937_v38  ;;  %v3602_v42 = vsub.f32 %v1824_v49, %v1894_v11  ;;  %v3604_v63 = vsub.f32 %v1809_v59, %v1888_v20 }
 0x2c3   : > { %v1941_v51 = vmul.f32 1.442695, %v3602_v42  ;;  %v1935_v41 = vmul.f32 1.442695, %v3604_v63 }
 0x2c4   : > { %v1892_v16 = vpop.xlane.xlu1 %1891 }
 0x2c5   : > { %2718 = vpow2.f32 %v1941_v51  ;;  %v3608_v14 = vsub.f32 %v1819_v36, %v1892_v16 }
 0x2c6   : > { %2720 = vpow2.f32 %v1935_v41  ;;  %v1896_v60 = vpop.xlane.xlu0 %1895 }
 0x2c7   : > { %v1939_v34 = vmul.f32 1.442695, %v3608_v14  ;;  %v3611_v46 = vsub.f32 %v1829_v48, %v1896_v60 }
 0x2c8   : > { %v1898_v55 = vpop.xlane.xlu1 %1897 }
 0x2c9   : > { %2722 = vpow2.f32 %v1939_v34  ;;  %v3613_v40 = vsub.f32 %v1834_v28, %v1898_v55  ;;  %v1943_v27 = vmul.f32 1.442695, %v3611_v46 }
 0x2ca   : > { %v1900_v44 = vpop.xlane.xlu0 %1899 }
 0x2cb   : > { %v1945_v47 = vmul.f32 1.442695, %v3613_v40  ;;  %v3617_v13 = vsub.f32 %v1839_v25, %v1900_v44 }
 0x2cc   : > { %v1902_v17 = vpop.xlane.xlu1 %1901 }
 0x2cd   : > { %2724 = vpow2.f32 %v1945_v47  ;;  %v3619_v7 = vsub.f32 %v1844_v19, %v1902_v17  ;;  %v1947_v54 = vmul.f32 1.442695, %v3617_v13 }
 0x2ce   : > { %v2717_v12 = vpop.eup %2716  ;;  %2726 = vpow2.f32 %v1943_v27  ;;  %v1904_v1 = vpop.xlane.xlu0 %1903 }
 0x2cf   : > { %v1949_v61 = vmul.f32 1.442695, %v3619_v7  ;;  %v3623_v57 = vsub.f32 %v1849_v22, %v1904_v1  ;;  %1969 = vadd.xlane.f32.xlu1 %v2717_v12 }
 0x2d0   : > { %v1906_v4 = vpop.xlane.xlu1 %1905 }
 0x2d1   : > { %2728 = vpow2.f32 %v1949_v61  ;;  %v3625_v58 = vsub.f32 %v1854_v52, %v1906_v4  ;;  %v1951_v9 = vmul.f32 1.442695, %v3623_v57 }
 0x2d2   : > { %v2719_v33 = vpop.eup %2718  ;;  %2730 = vpow2.f32 %v1947_v54  ;;  %v1908_v37 = vpop.xlane.xlu0 %1907 }
 0x2d3   : > { %v2721_v50 = vpop.eup %2720  ;;  %v1953_v18 = vmul.f32 1.442695, %v3625_v58  ;;  %v3629_v5 = vsub.f32 %v1859_v53, %v1908_v37  ;;  %1973 = vadd.xlane.f32.xlu1 %v2719_v33 }
 0x2d4   : > { %1967 = vadd.xlane.f32.xlu0 %v2721_v50  ;;  %v1910_v39 = vpop.xlane.xlu1 %1909 }
 0x2d5   : > { %2732 = vpow2.f32 %v1953_v18  ;;  %v3631_v59 = vsub.f32 %v1864_v24, %v1910_v39  ;;  %v1955_v30 = vmul.f32 1.442695, %v3629_v5 }
 0x2d6   : > { %v2723_v49 = vpop.eup %2722  ;;  %2734 = vpow2.f32 %v1951_v9  ;;  %v1912_v26 = vpop.xlane.xlu0 %1911 }
 0x2d7   : > { %v1957_v36 = vmul.f32 1.442695, %v3631_v59  ;;  %v3636_v45 = vsub.f32 %v3587_v15, %v1912_v26 }
 0x2d8   : > { %1971 = vadd.xlane.f32.xlu0 %v2723_v49  ;;  %v1914_v48 = vpop.xlane.xlu1 %1913 }
 0x2d9   : > { %2736 = vpow2.f32 %v1957_v36  ;;  %v3639_v62 = vsub.f32 %v3589_v10, %v1914_v48  ;;  %v1959_v3 = vmul.f32 1.442695, %v3636_v45 }
 0x2da   : > { %v2725_v28 = vpop.eup %2724  ;;  %2738 = vpow2.f32 %v1955_v30  ;;  %v1916_v25 = vpop.xlane.xlu0 %1915 }
 0x2db   : > { %v2727_v23 = vpop.eup %2726  ;;  %v1961_v19 = vmul.f32 1.442695, %v3639_v62  ;;  %v3644_v31 = vsub.f32 %v3592_v32, %v1916_v25  ;;  %1977 = vadd.xlane.f32.xlu1 %v2725_v28 }
 0x2dc   : > { %1975 = vadd.xlane.f32.xlu0 %v2727_v23  ;;  %v1918_v22 = vpop.xlane.xlu1 %1917 }
 0x2dd   : > { %2740 = vpow2.f32 %v1961_v19  ;;  %v3647_v43 = vsub.f32 %v3595_v8, %v1918_v22  ;;  %v1963_v21 = vmul.f32 1.442695, %v3644_v31 }
 0x2de   : > { %v2729_v52 = vpop.eup %2728  ;;  %2742 = vpow2.f32 %v1959_v3 }
 0x2df   : > { %v2731_v53 = vpop.eup %2730  ;;  %v1965_v2 = vmul.f32 1.442695, %v3647_v43  ;;  %1981 = vadd.xlane.f32.xlu1 %v2729_v52 }
 0x2e0   : > { %1979 = vadd.xlane.f32.xlu0 %v2731_v53 }
 0x2e1   : > { %2744 = vpow2.f32 %v1965_v2 }
 0x2e2   : > { %v2733_v24 = vpop.eup %2732  ;;  %2746 = vpow2.f32 %v1963_v21 }
 0x2e3   : > { %v2735_v29 = vpop.eup %2734  ;;  %1985 = vadd.xlane.f32.xlu1 %v2733_v24 }
 0x2e4   : > { %1983 = vadd.xlane.f32.xlu0 %v2735_v29 }
 0x2e6   : > { %v2737_v15 = vpop.eup %2736 }
 0x2e7   : > { %v2739_v35 = vpop.eup %2738  ;;  %1989 = vadd.xlane.f32.xlu1 %v2737_v15 }
 0x2e8   : > { %1987 = vadd.xlane.f32.xlu0 %v2739_v35 }
 0x2ea   : > { %v2741_v10 = vpop.eup %2740 }
 0x2eb   : > { %v2743_v0 = vpop.eup %2742  ;;  %1993 = vadd.xlane.f32.xlu1 %v2741_v10 }
 0x2ec   : > { %1991 = vadd.xlane.f32.xlu0 %v2743_v0 }
 0x2ee   : > { %v2745_v32 = vpop.eup %2744 }
 0x2ef   : > { %v2747_v8 = vpop.eup %2746  ;;  %1997 = vadd.xlane.f32.xlu1 %v2745_v32 }
 0x2f0   : > { %1995 = vadd.xlane.f32.xlu0 %v2747_v8 }
 0x358   : > { %v1970_v56 = vpop.xlane.xlu1 %1969 }
 0x359   : > { %2748 = vlog2.f32 %v1970_v56 }
 0x35c   : > { %v1974_v38 = vpop.xlane.xlu1 %1973 }
 0x35d   : > { %2750 = vlog2.f32 %v1974_v38  ;;  %v1968_v11 = vpop.xlane.xlu0 %1967 }
 0x35e   : > { %2752 = vlog2.f32 %v1968_v11 }
 0x361   : > { %v1972_v20 = vpop.xlane.xlu0 %1971 }
 0x362   : > { %2754 = vlog2.f32 %v1972_v20 }
 0x364   : > { %v1978_v51 = vpop.xlane.xlu1 %1977 }
 0x365   : > { %2756 = vlog2.f32 %v1978_v51  ;;  %v1976_v41 = vpop.xlane.xlu0 %1975 }
 0x366   : > { %v2749_v16 = vpop.eup %2748  ;;  %2758 = vlog2.f32 %v1976_v41 }
 0x367   : > { %v2002_v60 = vmul.f32 0.6931472, %v2749_v16 }
 0x368   : > { %v1982_v34 = vpop.xlane.xlu1 %1981 }
 0x369   : > { %v2032_v55 = vsub.f32 %v3599_v6, %v2002_v60  ;;  %2760 = vlog2.f32 %v1982_v34  ;;  %v1980_v27 = vpop.xlane.xlu0 %1979 }
 0x36a   : > { %v2751_v44 = vpop.eup %2750  ;;  %2762 = vlog2.f32 %v1980_v27 }
 0x36b   : > { %v2753_v47 = vpop.eup %2752  ;;  %2048 = vst [vmem:[%s3656_s13 + $0x8] sm:$0xff] %v2032_v55  ;;  %v2006_v17 = vmul.f32 0.6931472, %v2751_v44 }
 0x36c   : > { %v2000_v12 = vmul.f32 0.6931472, %v2753_v47  ;;  %v1986_v54 = vpop.xlane.xlu1 %1985 }
 0x36d   : > { %v2034_v1 = vsub.f32 %v3602_v42, %v2006_v17  ;;  %2764 = vlog2.f32 %v1986_v54  ;;  %v1984_v61 = vpop.xlane.xlu0 %1983 }
 0x36e   : > { %v2031_v4 = vsub.f32 %v3604_v63, %v2000_v12  ;;  %2766 = vlog2.f32 %v1984_v61 }
 0x36f   : > { %v2755_v6 = vpop.eup %2754  ;;  %2050 = vst [vmem:[%s3656_s13 + $0x18] sm:$0xff] %v2034_v1 }
 0x370   : > { %2047 = vst [vmem:[%s3656_s13] sm:$0xff] %v2031_v4  ;;  %v2004_v33 = vmul.f32 0.6931472, %v2755_v6  ;;  %v1990_v9 = vpop.xlane.xlu1 %1989 }
 0x371   : > { %2768 = vlog2.f32 %v1990_v9  ;;  %v1988_v37 = vpop.xlane.xlu0 %1987 }
 0x372   : > { %v2757_v50 = vpop.eup %2756  ;;  %v2033_v18 = vsub.f32 %v3608_v14, %v2004_v33  ;;  %2770 = vlog2.f32 %v1988_v37 }
 0x373   : > { %v2759_v42 = vpop.eup %2758  ;;  %v2010_v39 = vmul.f32 0.6931472, %v2757_v50 }
 0x374   : > { %2049 = vst [vmem:[%s3656_s13 + $0x10] sm:$0xff] %v2033_v18  ;;  %v2008_v49 = vmul.f32 0.6931472, %v2759_v42  ;;  %v1994_v30 = vpop.xlane.xlu1 %1993 }
 0x375   : > { %v2036_v63 = vsub.f32 %v3613_v40, %v2010_v39  ;;  %2772 = vlog2.f32 %v1994_v30  ;;  %v1992_v26 = vpop.xlane.xlu0 %1991 }
 0x376   : > { %v2761_v36 = vpop.eup %2760  ;;  %v2035_v48 = vsub.f32 %v3611_v46, %v2008_v49  ;;  %2774 = vlog2.f32 %v1992_v26 }
 0x377   : > { %v2763_v28 = vpop.eup %2762  ;;  %2052 = vst [vmem:[%s3656_s13 + $0x28] sm:$0xff] %v2036_v63  ;;  %v2014_v14 = vmul.f32 0.6931472, %v2761_v36 }
 0x378   : > { %2051 = vst [vmem:[%s3656_s13 + $0x20] sm:$0xff] %v2035_v48  ;;  %v2012_v3 = vmul.f32 0.6931472, %v2763_v28  ;;  %v1998_v25 = vpop.xlane.xlu1 %1997 }
 0x379   : > { %v2038_v23 = vsub.f32 %v3619_v7, %v2014_v14  ;;  %2776 = vlog2.f32 %v1998_v25  ;;  %v1996_v40 = vpop.xlane.xlu0 %1995 }
 0x37a   : > { %v2765_v19 = vpop.eup %2764  ;;  %v2037_v22 = vsub.f32 %v3617_v13, %v2012_v3  ;;  %2778 = vlog2.f32 %v1996_v40 }
 0x37b   : > { %v2767_v52 = vpop.eup %2766  ;;  %2054 = vst [vmem:[%s3656_s13 + $0x38] sm:$0xff] %v2038_v23  ;;  %v2018_v46 = vmul.f32 0.6931472, %v2765_v19 }
 0x37c   : > { %2053 = vst [vmem:[%s3656_s13 + $0x30] sm:$0xff] %v2037_v22  ;;  %v2016_v21 = vmul.f32 0.6931472, %v2767_v52 }
 0x37d   : > { %v2040_v53 = vsub.f32 %v3625_v58, %v2018_v46 }
 0x37e   : > { %v2769_v2 = vpop.eup %2768  ;;  %v2039_v24 = vsub.f32 %v3623_v57, %v2016_v21 }
 0x37f   : > { %v2771_v7 = vpop.eup %2770  ;;  %2056 = vst [vmem:[%s3656_s13 + $0x48] sm:$0xff] %v2040_v53  ;;  %v2022_v29 = vmul.f32 0.6931472, %v2769_v2 }
 0x380   : > { %2055 = vst [vmem:[%s3656_s13 + $0x40] sm:$0xff] %v2039_v24  ;;  %v2020_v13 = vmul.f32 0.6931472, %v2771_v7 }
 0x381   : > { %v2042_v15 = vsub.f32 %v3631_v59, %v2022_v29 }
 0x382   : > { %v2773_v35 = vpop.eup %2772  ;;  %v2041_v10 = vsub.f32 %v3629_v5, %v2020_v13 }
 0x383   : > { %v2775_v0 = vpop.eup %2774  ;;  %2058 = vst [vmem:[%s3656_s13 + $0x58] sm:$0xff] %v2042_v15  ;;  %v2026_v58 = vmul.f32 0.6931472, %v2773_v35 }
 0x384   : > { %2057 = vst [vmem:[%s3656_s13 + $0x50] sm:$0xff] %v2041_v10  ;;  %v2024_v32 = vmul.f32 0.6931472, %v2775_v0 }
 0x385   : > { %v2044_v57 = vsub.f32 %v3639_v62, %v2026_v58 }
 0x386   : > { %v2777_v8 = vpop.eup %2776  ;;  %v2043_v56 = vsub.f32 %v3636_v45, %v2024_v32 }
 0x387   : > { %v2779_v38 = vpop.eup %2778  ;;  %2060 = vst [vmem:[%s3656_s13 + $0x68] sm:$0xff] %v2044_v57  ;;  %v2030_v11 = vmul.f32 0.6931472, %v2777_v8 }
 0x388   : > { %2059 = vst [vmem:[%s3656_s13 + $0x60] sm:$0xff] %v2043_v56  ;;  %v2028_v59 = vmul.f32 0.6931472, %v2779_v38 }
 0x389   : > { %v2046_v20 = vsub.f32 %v3647_v43, %v2030_v11 }
 0x38a   : > { %v2045_v5 = vsub.f32 %v3644_v31, %v2028_v59 }
 0x38b   : > { %2062 = vst [vmem:[%s3656_s13 + $0x78] sm:$0xff] %v2046_v20 }
 0x38c   : > { %2061 = vst [vmem:[%s3656_s13 + $0x70] sm:$0xff] %v2045_v5 }
 0x38d PF: > { %s17_s28 = sadd.s32 1, %s2818_s28   ;;  %s3769_s24 = smov %s2810_s26 }
 0x38e   : > { %p14_p13 = scmp.ge.s32.totalorder %s17_s28, 6   ;;  %s3770_s25 = smov %s2814_s27 }
 0x38f   : > { %s3771_s26 = smov %s3774_s29  ;;  %s3772_s27 = smov %s3778_s30 }
 0x390   :  { %16 = sbr.rel (!%p14_p13) target bundleno = 3 (0x3), region = 92 }

// kernel: c1_deepsup_forward.2
= control target key start
LH: loop header
LB: loop body
LE: loop exit
PB: predicated region body
PF: predicated region fallthrough
CT: control target
= control target key end

     0   :  { %s2186_s24 = smov 0   ;;  %s2188_s25 = smov 0   ;;  %s2510_s0 = inlined_call_operand.vmem [shape: f32[2,8,8,32], index: 0, kind: input, shape index: {}, may-alias: {0,1,2}]   ;;  %s2511_s1 = inlined_call_operand.vmem [shape: f32[2,8,8,32], index: 1, kind: input, shape index: {}, may-alias: {0,1,2}]   ;;  %s2512_s2 = inlined_call_operand.vmem [shape: f32[2,8,8,32], index: 2, kind: input, shape index: {}, may-alias: {0,1,2}]   ;;  %s2513_s3 = inlined_call_operand.vmem [shape: bf16[3,3,32,128], index: 3, kind: input, shape index: {}]   ;;  %s2514_s4 = inlined_call_operand.vmem [shape: f32[1,128], index: 4, kind: input, shape index: {}]   ;;  %s2515_s5 = inlined_call_operand.vmem [shape: f32[128,128], index: 5, kind: input, shape index: {}]   ;;  %s2516_s6 = inlined_call_operand.vmem [shape: f32[1,128], index: 6, kind: input, shape index: {}]   ;;  %s2517_s7 = inlined_call_operand.vmem [shape: f32[2,64,128], index: 7, kind: output, shape index: {}]  }
   0x1   :  { %s2190_s26 = smov 0  }
   0x2 LB: > { %s29_s27 = sadd.s32 1, %s2140_s25  ;;  %p1709_p0 = scmp.ge.s32.totalorder %s2144_s26, 1  ;;  %s2144_s26 = sphi %s2190_s26, %s17_s26   ;;  %s2140_s25 = sphi %s2188_s25, %s2525_s25   ;;  %s2136_s24 = sphi %s2186_s24, %s2524_s24  }
   0x3   : > { %p31_p1 = scmp.ge.s32.totalorder %s29_s27, 2  ;;  %p320_p2 = scmp.lt.s32.totalorder %s2144_s26, 3 }
   0x5   : > { %s2527_s27 = smov (%p31_p1, %s29_s27), 0  ;;  %p321_p3 = pnand %p1709_p0, %p320_p2 }
   0x7   : > { %324 = sbr.rel (%p321_p3) target bundleno = 837 (0x345), region = 48 }
   0xc   : > { %v2072_v0 = vld [vmem:[%s2513_s3 + $0x8] sm:$0xff]   ;;  %p385_p4 = scmp.lt.s32.totalorder %s2136_s24, 1  ;;  %v2073_v1 = vld [vmem:[%s2513_s3 + $0x38] sm:$0xff]   ;;  %v2213_v2 = vld [vmem:[%s2513_s3] sm:$0xff]   ;;  %vm503_vm0 = vcmask 261120   ;;  %vm481_vm1 = vcmask 1043456  }
   0xd   : > { %2044 = vmatprep.subr.bf16.mxu1 %v2072_v0  ;;  %1892 = vmatprep.subr.bf16.mxu0 %v2073_v1  ;;  %v2075_v3 = vld [vmem:[%s2513_s3 + $0x30] sm:$0xff]   ;;  %v2076_v4 = vld [vmem:[%s2513_s3 + $0x18] sm:$0xff]   ;;  %v2078_v25 = vld [vmem:[%s2513_s3 + $0x28] sm:$0xff]   ;;  %vm1285_vm2 = vcmask 1040384   ;;  %vm1318_vm3 = vcmask 1046528  }
   0xe   : > { %s2529_s24 = smov (!%p385_p4, %s2136_s24), 1  ;;  %2046 = vmatpush3.bf16.msra.mxu1 %v2072_v0  ;;  %1893 = vmatpush3.bf16.msra.mxu0 %v2073_v1  ;;  %v2077_v11 = vld [vmem:[%s2513_s3 + $0x10] sm:$0xff]   ;;  %v2080_v31 = vld [vmem:[%s2513_s3 + $0x20] sm:$0xff]   ;;  %v2079_v33 = vld [vmem:[%s2513_s3 + $0x48] sm:$0xff]  }
   0xf   : > { %2045 = vmatprep.subr.bf16.mxu1 %v2213_v2  ;;  %s2219_s13 = sshll.u32 %s2529_s24, 6  ;;  %1894 = vmatprep.subr.bf16.mxu0 %v2075_v3  ;;  %v2083_v34 = vld [vmem:[%s2513_s3 + $0x78] sm:$0xff]   ;;  %v2081_v36 = vld [vmem:[%s2513_s3 + $0x40] sm:$0xff]   ;;  %v2085_v37 = vld [vmem:[%s2513_s3 + $0x70] sm:$0xff]  }
  0x10   : > { %s2228_s18 = scalar_lea.vmem %s2510_s0, %s2219_s13  ;;  %s405_s21 = scalar_lea.vmem %s2511_s1, %s2219_s13  ;;  %v2082_v38 = vld [vmem:[%s2513_s3 + $0x58] sm:$0xff]   ;;  %v2084_v39 = vld [vmem:[%s2513_s3 + $0x50] sm:$0xff]   ;;  %v2086_v40 = vld [vmem:[%s2513_s3 + $0x68] sm:$0xff]  }
  0x11   : > { %v440_v5 = vld [vmem:[%s2228_s18 + $0x18] sm:$0xff]  ;;  %v441_v6 = vld [vmem:[%s2228_s18 + $0x20] sm:$0xff]  ;;  %v442_v7 = vld [vmem:[%s2228_s18 + $0x28] sm:$0xff]  ;;  %s1811_s22 = sadd.s32 56, %s2219_s13  ;;  %s2483_s14 = scalar_lea.vmem %s2517_s7, %s2219_s13 }
  0x12   : > { %2047 = vmatpush3.bf16.msra.mxu1 %v2213_v2  ;;  %v2239_v8 = vpack.c.bf16 %v441_v6, %v440_v5  ;;  %v443_v9 = vld [vmem:[%s2228_s18 + $0x30] sm:$0xff]  ;;  %v438_v10 = vld [vmem:[%s2228_s18 + $0x8] sm:$0xff]  ;;  %s421_s30 = scalar_lea.vmem %s2512_s2, %s1811_s22  ;;  %1895 = vmatpush3.bf16.msra.mxu0 %v2075_v3  ;;  %v437_v13 = vld [vmem:[%s2228_s18] sm:$0xff] }
  0x13   : > { %v2249_v12 = vpack.c.bf16 %v443_v9, %v442_v7  ;;  %1928 = vmatprep.subr.bf16.mxu1 %v2076_v4  ;;  %v439_v14 = vld [vmem:[%s2228_s18 + $0x10] sm:$0xff]  ;;  %v445_v15 = vld [vmem:[%s405_s21] sm:$0xff]  ;;  %1904 = vmatprep.subr.bf16.mxu0 %v2072_v0  ;;  %v444_v23 = vld [vmem:[%s2228_s18 + $0x38] sm:$0xff] }
  0x14   : > { %1912 = vmatprep.mubr.msk.bf16.mxu1 %vm503_vm0, %v2239_v8  ;;  %v450_v16 = vmul.f32 0.0, %v445_v15  ;;  %v2255_v17 = vpack.c.bf16 %v439_v14, %v438_v10  ;;  %v446_v18 = vld [vmem:[%s421_s30] sm:$0xff]  ;;  %v485_v19 = vrot.slane %v2239_v8, 4  ;;  %v2088_v42 = vld [vmem:[%s2513_s3 + $0x88] sm:$0xff]   ;;  %v1381_v44 = vld [vmem:[%s2515_s5 + $0x78] sm:$0xff] }
  0x15   : > { %1913 = vmatmul.mubr.msk.bf16.vlgmr.msra.gmra.mxu1 %vm503_vm0, %v2249_v12  ;;  %v451_v20 = vmul.f32 0.0, %v446_v18  ;;  %v487_v24 = vrot.slane %v2249_v12, 4  ;;  %v2087_v41 = vld [vmem:[%s2513_s3 + $0x60] sm:$0xff]   ;;  %v1380_v45 = vld [vmem:[%s2515_s5 + $0x70] sm:$0xff]  ;;  %v1379_v46 = vld [vmem:[%s2515_s5 + $0x68] sm:$0xff] }
  0x16   : > { %1929 = vmatpush3.bf16.msra.mxu1 %v2076_v4  ;;  %v452_v21 = vpack.c.bf16 %v437_v13, %v450_v16  ;;  %v483_v22 = vrot.slane %v2255_v17, 4  ;;  %v2089_v43 = vld [vmem:[%s2513_s3 + $0x80] sm:$0xff]   ;;  %v1377_v48 = vld [vmem:[%s2515_s5 + $0x58] sm:$0xff]  ;;  %v1376_v49 = vld [vmem:[%s2515_s5 + $0x50] sm:$0xff] }
  0x17   : > { %1930 = vmatprep.subr.bf16.mxu1 %v2077_v11  ;;  %v2268_v28 = vpack.c.bf16 %v451_v20, %v444_v23  ;;  %v488_v30 = vsel %vm481_vm1, %v485_v19, %v487_v24  ;;  %v1378_v47 = vld [vmem:[%s2515_s5 + $0x60] sm:$0xff]  ;;  %v1375_v50 = vld [vmem:[%s2515_s5 + $0x48] sm:$0xff]  ;;  %v1373_v52 = vld [vmem:[%s2515_s5 + $0x38] sm:$0xff] }
  0x18   : > { %v482_v26 = vrot.slane %v452_v21, 4  ;;  %1932 = vmatprep.mubr.msk.bf16.mxu1 %vm503_vm0, %v452_v21  ;;  %v486_v27 = vsel %vm481_vm1, %v483_v22, %v485_v19  ;;  %v1374_v51 = vld [vmem:[%s2515_s5 + $0x40] sm:$0xff]  ;;  %v1372_v53 = vld [vmem:[%s2515_s5 + $0x30] sm:$0xff]  ;;  %v1371_v54 = vld [vmem:[%s2515_s5 + $0x28] sm:$0xff] }
  0x19   : > { %v489_v32 = vrot.slane %v2268_v28, 4  ;;  %v1370_v55 = vld [vmem:[%s2515_s5 + $0x20] sm:$0xff]  ;;  %v1369_v56 = vld [vmem:[%s2515_s5 + $0x18] sm:$0xff]  ;;  %v1368_v57 = vld [vmem:[%s2515_s5 + $0x10] sm:$0xff] }
  0x1a   : > { %v484_v29 = vsel %vm481_vm1, %v482_v26, %v483_v22  ;;  %1931 = vmatpush3.bf16.msra.mxu1 %v2077_v11  ;;  %v1367_v58 = vld [vmem:[%s2515_s5 + $0x8] sm:$0xff]  ;;  %v1366_v59 = vld [vmem:[%s2515_s5] sm:$0xff] }
  0x1b   : > { %1896 = vmatprep.mubr.msk.bf16.mxu0 %vm503_vm0, %v484_v29  ;;  %1952 = vmatprep.subr.bf16.mxu1 %v2078_v25  ;;  %v490_v35 = vsel %vm481_vm1, %v487_v24, %v489_v32 }
  0x1c   : > { %1897 = vmatmul.mubr.msk.bf16.vlgmr.msra.gmra.mxu0 %vm503_vm0, %v486_v27 }
  0x1d   : > { %1905 = vmatpush3.bf16.msra.mxu0 %v2072_v0  ;;  %1933 = vmatmul.mubr.msk.bf16.vlgmr.msra.gmra.mxu1 %vm503_vm0, %v2255_v17 }
  0x1e   : > { %1900 = vmatprep.mubr.msk.bf16.mxu0 %vm503_vm0, %v488_v30  ;;  %1906 = vmatprep.subr.bf16.mxu0 %v2213_v2 }
  0x1f   : > { %1936 = vmatprep.mubr.msk.bf16.mxu1 %vm503_vm0, %v2239_v8  ;;  %1953 = vmatpush3.bf16.msra.mxu1 %v2078_v25 }
  0x20   : > { %1954 = vmatprep.subr.bf16.mxu1 %v2080_v31 }
  0x21   : > { %1907 = vmatpush3.bf16.msra.mxu0 %v2213_v2 }
  0x22   : > { %1916 = vmatprep.subr.bf16.mxu0 %v2079_v33 }
  0x23   : > { %1955 = vmatpush3.bf16.msra.mxu1 %v2080_v31 }
  0x24   : > { %1901 = vmatmul.mubr.msk.bf16.gmra.mxu0 %vm503_vm0, %v490_v35  ;;  %1976 = vmatprep.subr.bf16.mxu1 %v2083_v34 }
  0x25   : > { %1937 = vmatmul.mubr.msk.bf16.gmra.mxu1 %vm503_vm0, %v2249_v12  ;;  %1908 = vmatprep.mubr.msk.bf16.mxu0 %vm503_vm0, %v452_v21 }
  0x26   : > { %1956 = vmatprep.mubr.msk.bf16.mxu1 %vm503_vm0, %v452_v21 }
  0x2c   : > { %1909 = vmatmul.mubr.msk.bf16.vlgmr.msra.gmra.mxu0 %vm503_vm0, %v2255_v17 }
  0x2d   : > { %1917 = vmatpush3.bf16.msra.mxu0 %v2079_v33  ;;  %1957 = vmatmul.mubr.msk.bf16.vlgmr.msra.gmra.mxu1 %vm503_vm0, %v2255_v17 }
  0x2e   : > { %1918 = vmatprep.subr.bf16.mxu0 %v2081_v36  ;;  %1920 = vmatprep.mubr.msk.bf16.mxu0 %vm503_vm0, %v484_v29 }
  0x2f   : > { %1960 = vmatprep.mubr.msk.bf16.mxu1 %vm503_vm0, %v2239_v8  ;;  %1977 = vmatpush3.bf16.msra.mxu1 %v2083_v34 }
  0x30   : > { %1978 = vmatprep.subr.bf16.mxu1 %v2085_v37 }
  0x31   : > { %1919 = vmatpush3.bf16.msra.mxu0 %v2081_v36 }
  0x32   : > { %1940 = vmatprep.subr.bf16.mxu0 %v2082_v38 }
  0x33   : > { %1979 = vmatpush3.bf16.msra.mxu1 %v2085_v37 }
  0x34   : > { %1921 = vmatmul.mubr.msk.bf16.vlgmr.msra.gmra.mxu0 %vm503_vm0, %v486_v27  ;;  %2000 = vmatprep.subr.mxu1 %v1381_v44 }
  0x35   : > { %1941 = vmatpush3.bf16.msra.mxu0 %v2082_v38  ;;  %1961 = vmatmul.mubr.msk.bf16.gmra.mxu1 %vm503_vm0, %v2249_v12 }
  0x36   : > { %1924 = vmatprep.mubr.msk.bf16.mxu0 %vm503_vm0, %v488_v30  ;;  %1942 = vmatprep.subr.bf16.mxu0 %v2084_v39 }
  0x37   : > { %1980 = vmatprep.mubr.msk.bf16.mxu1 %vm503_vm0, %v2255_v17 }
  0x39   : > { %1943 = vmatpush3.bf16.msra.mxu0 %v2084_v39 }
  0x3a   : > { %1964 = vmatprep.subr.bf16.mxu0 %v2086_v40 }
  0x3c   : > { %1925 = vmatmul.mubr.msk.bf16.gmra.mxu0 %vm503_vm0, %v490_v35 }
  0x3d   : > { %1981 = vmatmul.mubr.msk.bf16.vlgmr.msra.gmra.mxu1 %vm503_vm0, %v2239_v8  ;;  %1944 = vmatprep.mubr.msk.bf16.mxu0 %vm503_vm0, %v484_v29 }
  0x3e   : > { %1984 = vmatprep.mubr.msk.bf16.mxu1 %vm503_vm0, %v2249_v12  ;;  %2001 = vmatpush3.msra.mxu1 %v1381_v44 }
  0x3f   : > { %2002 = vmatprep.subr.mxu1 %v1380_v45 }
  0x40   : > { %2003 = vmatpush3.msra.mxu1 %v1380_v45 }
  0x41   : > { %2004 = vmatprep.subr.mxu1 %v1379_v46 }
  0x42   : > { %2005 = vmatpush3.msra.mxu1 %v1379_v46 }
  0x43   : > { %2006 = vmatprep.subr.mxu1 %v1378_v47 }
  0x44   : > { %1945 = vmatmul.mubr.msk.bf16.vlgmr.msra.gmra.mxu0 %vm503_vm0, %v486_v27  ;;  %2007 = vmatpush3.msra.mxu1 %v1378_v47 }
  0x45   : > { %1965 = vmatpush3.bf16.msra.mxu0 %v2086_v40  ;;  %1985 = vmatmul.mubr.msk.bf16.gmra.mxu1 %vm503_vm0, %v2268_v28 }
  0x46   : > { %1948 = vmatprep.mubr.msk.bf16.mxu0 %vm503_vm0, %v488_v30  ;;  %1966 = vmatprep.subr.bf16.mxu0 %v2087_v41 }
  0x47   : > { %2008 = vmatprep.subr.mxu1 %v1377_v48 }
  0x48   : > { %2009 = vmatpush3.msra.mxu1 %v1377_v48 }
  0x49   : > { %1967 = vmatpush3.bf16.msra.mxu0 %v2087_v41  ;;  %2010 = vmatprep.subr.mxu1 %v1376_v49 }
  0x4a   : > { %1988 = vmatprep.subr.bf16.mxu0 %v2088_v42  ;;  %2011 = vmatpush3.msra.mxu1 %v1376_v49 }
  0x4b   : > { %2012 = vmatprep.subr.mxu1 %v1375_v50 }
  0x4c   : > { %1949 = vmatmul.mubr.msk.bf16.gmra.mxu0 %vm503_vm0, %v490_v35  ;;  %2013 = vmatpush3.msra.mxu1 %v1375_v50 }
  0x4d   : > { %1968 = vmatprep.mubr.msk.bf16.mxu0 %vm503_vm0, %v2255_v17  ;;  %2014 = vmatprep.subr.mxu1 %v1374_v51 }
  0x4e   : > { %2015 = vmatpush3.msra.mxu1 %v1374_v51 }
  0x4f   : > { %2016 = vmatprep.subr.mxu1 %v1373_v52 }
  0x50   : > { %2017 = vmatpush3.msra.mxu1 %v1373_v52 }
  0x51   : > { %2018 = vmatprep.subr.mxu1 %v1372_v53 }
  0x52   : > { %2019 = vmatpush3.msra.mxu1 %v1372_v53 }
  0x53   : > { %2020 = vmatprep.subr.mxu1 %v1371_v54 }
  0x54   : > { %1969 = vmatmul.mubr.msk.bf16.vlgmr.msra.gmra.mxu0 %vm503_vm0, %v2239_v8  ;;  %2021 = vmatpush3.msra.mxu1 %v1371_v54 }
  0x55   : > { %1989 = vmatpush3.bf16.msra.mxu0 %v2088_v42  ;;  %1972 = vmatprep.mubr.msk.bf16.mxu0 %vm503_vm0, %v2249_v12 }
  0x56   : > { %1990 = vmatprep.subr.bf16.mxu0 %v2089_v43  ;;  %2022 = vmatprep.subr.mxu1 %v1370_v55 }
  0x57   : > { %2023 = vmatpush3.msra.mxu1 %v1370_v55 }
  0x58   : > { %2024 = vmatprep.subr.mxu1 %v1369_v56 }
  0x59   : > { %1991 = vmatpush3.bf16.msra.mxu0 %v2089_v43  ;;  %2025 = vmatpush3.msra.mxu1 %v1369_v56 }
  0x5a   : > { %2026 = vmatprep.subr.mxu1 %v1368_v57 }
  0x5b   : > { %2027 = vmatpush3.msra.mxu1 %v1368_v57 }
  0x5c   : > { %1973 = vmatmul.mubr.msk.bf16.gmra.mxu0 %vm503_vm0, %v2268_v28  ;;  %2028 = vmatprep.subr.mxu1 %v1367_v58 }
  0x5d   : > { %1992 = vmatprep.mubr.msk.bf16.mxu0 %vm503_vm0, %v2255_v17  ;;  %2029 = vmatpush3.msra.mxu1 %v1367_v58 }
  0x5e   : > { %2030 = vmatprep.subr.mxu1 %v1366_v59 }
  0x5f   : > { %2031 = vmatpush3.msra.mxu1 %v1366_v59 }
  0x64   : > { %1993 = vmatmul.mubr.msk.bf16.vlgmr.msra.gmra.mxu0 %vm503_vm0, %v2239_v8 }
  0x65   : > { %1996 = vmatprep.mubr.msk.bf16.mxu0 %vm503_vm0, %v2249_v12 }
  0x6c   : > { %1997 = vmatmul.mubr.msk.bf16.gmra.mxu0 %vm503_vm0, %v2268_v28 }
  0xd5   : > { %v1914_v60 = vpop.f32.mrf.mxu1 }
  0xd7   : > { %v655_v61 = vpop.f32.mrf.mxu1 }
  0xd9   : > { %v1915_v62 = vpop.f32.mrf.mxu1 }
  0xdb   : > { %v658_v63 = vpop.f32.mrf.mxu1 }
  0xdc   : > { %v1898_v0 = vpop.f32.mrf.mxu0 }
  0xdd   : > { %v2409_v1 = vpop.f32.mrf.mxu1 }
  0xde   : > { %v550_v2 = vpop.f32.mrf.mxu0 }
  0xdf   : > { %v2411_v3 = vpop.f32.mrf.mxu1 }
  0xe0   : > { %2518 = vst [vmem:[#allocation2_spill] sm:$0xff] %v2411_v3  ;;  %v1899_v4 = vpop.f32.mrf.mxu0 }
  0xe1   : > { %v1935_v5 = vpop.f32.mrf.mxu1 }
  0xe2   : > { %v553_v6 = vpop.f32.mrf.mxu0 }
  0xe3   : > { %v801_v7 = vpop.f32.mrf.mxu1 }
  0xe4   : > { %v1902_v8 = vpop.f32.mrf.mxu0 }
  0xe5   : > { %v1938_v10 = vpop.f32.mrf.mxu1  ;;  %v664_v53 = vadd.f32 %v1914_v60, %v1902_v8 }
  0xe6   : > { %v566_v9 = vpop.f32.mrf.mxu0 }
  0xe7   : > { %v814_v13 = vpop.f32.mrf.mxu1  ;;  %v656_v55 = vadd.f32 %v655_v61, %v566_v9  ;;  %v2521_v60 = vld [vmem:[#allocation2_spill] sm:$0xff] }
  0xe8   : > { %v1903_v11 = vpop.f32.mrf.mxu0 }
  0xe9   : > { %v1939_v15 = vpop.f32.mrf.mxu1  ;;  %v667_v56 = vadd.f32 %v1915_v62, %v1903_v11 }
  0xea   : > { %v569_v12 = vpop.f32.mrf.mxu0 }
  0xeb   : > { %v2413_v18 = vpop.f32.mrf.mxu1  ;;  %v659_v57 = vadd.f32 %v658_v63, %v569_v12 }
  0xec   : > { %v1910_v14 = vpop.f32.mrf.mxu0  ;;  %2519 = vst [vmem:[#allocation3_spill] sm:$0xff] %v2413_v18 }
  0xed   : > { %v1958_v21 = vpop.f32.mrf.mxu1  ;;  %v648_v54 = vadd.f32 %v1910_v14, %v1898_v0 }
  0xee   : > { %v639_v16 = vpop.f32.mrf.mxu0 }
  0xef   : > { %v957_v24 = vpop.f32.mrf.mxu1  ;;  %v640_v58 = vadd.f32 %v639_v16, %v550_v2 }
  0xf0   : > { %v1911_v17 = vpop.f32.mrf.mxu0 }
  0xf1   : > { %v1959_v27 = vpop.f32.mrf.mxu1  ;;  %v651_v18 = vadd.f32 %v1911_v17, %v1899_v4 }
  0xf2   : > { %v642_v19 = vpop.f32.mrf.mxu0 }
  0xf3   : > { %v960_v30 = vpop.f32.mrf.mxu1 }
  0xf4   : > { %v1922_v20 = vpop.f32.mrf.mxu0 }
  0xf5   : > { %v1962_v33 = vpop.f32.mrf.mxu1  ;;  %v807_v3 = vadd.f32 %v2409_v1, %v1922_v20 }
  0xf6   : > { %v721_v22 = vpop.f32.mrf.mxu0 }
  0xf7   : > { %v973_v36 = vpop.f32.mrf.mxu1  ;;  %v799_v0 = vadd.f32 %v2521_v60, %v721_v22 }
  0xf8   : > { %v1923_v23 = vpop.f32.mrf.mxu0 }
  0xf9   : > { %v1963_v39 = vpop.f32.mrf.mxu1  ;;  %v810_v14 = vadd.f32 %v1935_v5, %v1923_v23 }
  0xfa   : > { %v724_v25 = vpop.f32.mrf.mxu0 }
  0xfb   : > { %v976_v42 = vpop.f32.mrf.mxu1  ;;  %v802_v9 = vadd.f32 %v801_v7, %v724_v25 }
  0xfc   : > { %v1926_v26 = vpop.f32.mrf.mxu0 }
  0xfd   : > { %v1982_v45 = vpop.f32.mrf.mxu1  ;;  %v2419_v12 = vadd.f32 %v1938_v10, %v1926_v26 }
  0xfe   : > { %v737_v28 = vpop.f32.mrf.mxu0  ;;  %v1165_v2 = vadd.f32 %v1982_v45, %v807_v3 }
  0xff   : > { %v1132_v48 = vpop.f32.mrf.mxu1  ;;  %v2421_v63 = vadd.f32 %v814_v13, %v737_v28 }
 0x100   : > { %v1927_v29 = vpop.f32.mrf.mxu0  ;;  %v1163_v17 = vadd.f32 %v1132_v48, %v799_v0 }
 0x101   : > { %v1983_v51 = vpop.f32.mrf.mxu1  ;;  %v2423_v4 = vadd.f32 %v1939_v15, %v1927_v29 }
 0x102   : > { %v2415_v31 = vpop.f32.mrf.mxu0 }
 0x103   : > { %2520 = vst [vmem:[#allocation4_spill] sm:$0xff] %v2415_v31  ;;  %v643_v31 = vadd.f32 %v642_v19, %v553_v6  ;;  %v1135_v61 = vpop.f32.mrf.mxu1  ;;  %v2425_v6 = vadd.f32 %v1983_v51, %v810_v14 }
 0x104   : > { %v1946_v32 = vpop.f32.mrf.mxu0  ;;  %v1164_v22 = vadd.f32 %v1135_v61, %v802_v9 }
 0x105   : > { %v966_v16 = vadd.f32 %v1958_v21, %v1946_v32 }
 0x106   : > { %v880_v34 = vpop.f32.mrf.mxu0 }
 0x107   : > { %v958_v20 = vadd.f32 %v957_v24, %v880_v34 }
 0x108   : > { %v1947_v35 = vpop.f32.mrf.mxu0 }
 0x109   : > { %v969_v23 = vadd.f32 %v1959_v27, %v1947_v35 }
 0x10a   : > { %v883_v37 = vpop.f32.mrf.mxu0 }
 0x10b   : > { %v961_v25 = vadd.f32 %v960_v30, %v883_v37 }
 0x10c   : > { %v1950_v38 = vpop.f32.mrf.mxu0 }
 0x10d   : > { %v982_v13 = vadd.f32 %v1962_v33, %v1950_v38 }
 0x10e   : > { %v896_v40 = vpop.f32.mrf.mxu0 }
 0x10f   : > { %v974_v15 = vadd.f32 %v973_v36, %v896_v40 }
 0x110   : > { %v1951_v41 = vpop.f32.mrf.mxu0 }
 0x111   : > { %v985_v29 = vadd.f32 %v1963_v39, %v1951_v41 }
 0x112   : > { %v899_v43 = vpop.f32.mrf.mxu0 }
 0x113   : > { %v977_v30 = vadd.f32 %v976_v42, %v899_v43 }
 0x114   : > { %v1970_v44 = vpop.f32.mrf.mxu0 }
 0x115   : > { %v1075_v8 = vadd.f32 %v1970_v44, %v648_v54 }
 0x116   : > { %v1042_v46 = vpop.f32.mrf.mxu0 }
 0x117   : > { %v1073_v11 = vadd.f32 %v1042_v46, %v640_v58  ;;  %v1271_v5 = vrot.slane %v1075_v8, 7 }
 0x118   : > { %v1971_v47 = vpop.f32.mrf.mxu0 }
 0x119   : > { %v1076_v1 = vadd.f32 %v1971_v47, %v651_v18  ;;  %v1269_v44 = vrot.slane %v1073_v11, 7  ;;  %v1986_v18 = vpop.f32.mrf.mxu1  ;;  %v1288_v24 = vsel %vm1285_vm2, 0.0, %v1271_v5 }
 0x11a   : > { %v1045_v49 = vpop.f32.mrf.mxu0 }
 0x11b   : > { %v1074_v10 = vadd.f32 %v1045_v49, %v643_v31  ;;  %v1272_v32 = vrot.slane %v1076_v1, 7  ;;  %v1286_v31 = vsel %vm1285_vm2, 0.0, %v1269_v44 }
 0x11c   : > { %v1974_v50 = vpop.f32.mrf.mxu0 }
 0x11d   : > { %v1079_v28 = vadd.f32 %v1974_v50, %v664_v53  ;;  %v1270_v35 = vrot.slane %v1074_v10, 7  ;;  %v1289_v41 = vsel %vm1285_vm2, 0.0, %v1272_v32 }
 0x11e   : > { %v1058_v52 = vpop.f32.mrf.mxu0 }
 0x11f   : > { %v1077_v45 = vadd.f32 %v1058_v52, %v656_v55  ;;  %v1275_v38 = vrot.slane %v1079_v28, 7  ;;  %v1148_v52 = vpop.f32.mrf.mxu1  ;;  %v1287_v55 = vsel %vm1285_vm2, 0.0, %v1270_v35 }
 0x120   : > { %v1975_v59 = vpop.f32.mrf.mxu0 }
 0x121   : > { %v1273_v48 = vrot.slane %v1077_v45, 7  ;;  %v1080_v49 = vadd.f32 %v1975_v59, %v667_v56  ;;  %v1292_v14 = vsel %vm1285_vm2, 0.0, %v1275_v38  ;;  %v1804_v56 = vld [vmem:[%s2514_s4] ss:$0 sm:$0xff]  ;;  %v1167_v45 = vadd.f32 %v1148_v52, %v2421_v63 }
 0x122   : > { %v1061_v62 = vpop.f32.mrf.mxu0 }
 0x123   : > { %v1078_v53 = vadd.f32 %v1061_v62, %v659_v57  ;;  %v1290_v61 = vsel %vm1285_vm2, 0.0, %v1273_v48  ;;  %v1276_v11 = vrot.slane %v1080_v49, 7 }
 0x124   : > { %v1994_v19 = vpop.f32.mrf.mxu0 }
 0x125   : > { %v1255_v7 = vadd.f32 %v1994_v19, %v966_v16 }
 0x126   : > { %v1222_v26 = vpop.f32.mrf.mxu0 }
 0x127   : > { %v1304_v3 = vrot.slane %v1255_v7, 1  ;;  %v1253_v21 = vadd.f32 %v1222_v26, %v958_v20 }
 0x128   : > { %v1995_v46 = vpop.f32.mrf.mxu0 }
 0x129   : > { %v1321_v34 = vsel %vm1318_vm3, %v1304_v3, 0.0  ;;  %v1302_v47 = vrot.slane %v1253_v21, 1  ;;  %v1256_v27 = vadd.f32 %v1995_v46, %v969_v23  ;;  %v2522_v21 = vld [vmem:[#allocation4_spill] sm:$0xff] }
 0x12a   : > { %v1329_v33 = vadd.f32 %v1321_v34, %v1288_v24  ;;  %v1225_v37 = vpop.f32.mrf.mxu0 }
 0x12b   : > { %v1319_v36 = vsel %vm1318_vm3, %v1302_v47, 0.0  ;;  %v1305_v39 = vrot.slane %v1256_v27, 1  ;;  %v1254_v40 = vadd.f32 %v1225_v37, %v961_v25 }
 0x12c   : > { %v1327_v50 = vadd.f32 %v1319_v36, %v1286_v31  ;;  %v1998_v51 = vpop.f32.mrf.mxu0  ;;  %v1337_v58 = vadd.f32 %v1329_v33, %v1165_v2  ;;  %v1987_v2 = vpop.f32.mrf.mxu1 }
 0x12d   : > { %v1322_v42 = vsel %vm1318_vm3, %v1305_v39, 0.0  ;;  %v1303_v43 = vrot.slane %v1254_v40, 1  ;;  %v1259_v54 = vadd.f32 %v1998_v51, %v982_v13  ;;  %v1170_v36 = vadd.f32 %v1987_v2, %v2423_v4  ;;  %v1805_v4 = vld [vmem:[%s2516_s6] ss:$0 sm:$0xff] }
 0x12e   : > { %v1335_v8 = vadd.f32 %v1327_v50, %v1163_v17  ;;  %v1330_v60 = vadd.f32 %v1322_v42, %v1289_v41  ;;  %v1238_v0 = vpop.f32.mrf.mxu0  ;;  %v1274_v17 = vrot.slane %v1078_v53, 7  ;;  %v1352_v10 = vadd.f32 %v1804_v56, %v1337_v58 }
 0x12f   : > { %v1320_v9 = vsel %vm1318_vm3, %v1303_v43, 0.0  ;;  %v1308_v59 = vrot.slane %v1259_v54, 1  ;;  %v1257_v57 = vadd.f32 %v1238_v0, %v974_v15  ;;  %v2523_v15 = vld [vmem:[#allocation3_spill] sm:$0xff] }
 0x130   : > { %v1328_v62 = vadd.f32 %v1320_v9, %v1287_v55  ;;  %v1999_v16 = vpop.f32.mrf.mxu0  ;;  %v1350_v1 = vadd.f32 %v1804_v56, %v1335_v8  ;;  %v1338_v7 = vadd.f32 %v1330_v60, %v2425_v6  ;;  %v818_v32 = vadd.f32 %v2523_v15, %v2522_v21  ;;  %v1151_v6 = vpop.f32.mrf.mxu1 }
 0x131   : > { %v1325_v19 = vsel %vm1318_vm3, %v1308_v59, 0.0  ;;  %v1306_v20 = vrot.slane %v1257_v57, 1  ;;  %v1260_v5 = vadd.f32 %v1999_v16, %v985_v29  ;;  %v1169_v29 = vadd.f32 %v1986_v18, %v2419_v12 }
 0x132   : > { %v1336_v23 = vadd.f32 %v1328_v62, %v1164_v22  ;;  %v1241_v25 = vpop.f32.mrf.mxu0  ;;  %v1358_v44 = vmax.f32 %v1350_v1, 0.0  ;;  %v1333_v26 = vadd.f32 %v1325_v19, %v1292_v14  ;;  %v1293_v22 = vsel %vm1285_vm2, 0.0, %v1276_v11 }
 0x133   : > { %v1323_v13 = vsel %vm1318_vm3, %v1306_v20, 0.0  ;;  %v1309_v28 = vrot.slane %v1260_v5, 1  ;;  %v1258_v3 = vadd.f32 %v1241_v25, %v977_v30  ;;  %v1353_v30 = vadd.f32 %v1804_v56, %v1338_v7 }
 0x134   : > { %v1351_v46 = vadd.f32 %v1804_v56, %v1336_v23  ;;  %v1331_v24 = vadd.f32 %v1323_v13, %v1290_v61  ;;  %2032 = vmatprep.mubr.f32.mxu1 %v1358_v44  ;;  %v1291_v33 = vsel %vm1285_vm2, 0.0, %v1274_v17  ;;  %v1341_v37 = vadd.f32 %v1333_v26, %v1169_v29 }
 0x135   : > { %v1326_v34 = vsel %vm1318_vm3, %v1309_v28, 0.0  ;;  %v1307_v47 = vrot.slane %v1258_v3, 1  ;;  %v1360_v38 = vmax.f32 %v1352_v10, 0.0  ;;  %v1168_v39 = vadd.f32 %v1151_v6, %v818_v32 }
 0x136   : > { %v1359_v27 = vmax.f32 %v1351_v46, 0.0  ;;  %v1339_v31 = vadd.f32 %v1331_v24, %v1167_v45  ;;  %v1334_v35 = vadd.f32 %v1326_v34, %v1293_v22  ;;  %v1361_v48 = vmax.f32 %v1353_v30, 0.0 }
 0x137   : > { %v1324_v63 = vsel %vm1318_vm3, %v1307_v47, 0.0  ;;  %v1356_v50 = vadd.f32 %v1804_v56, %v1341_v37 }
 0x138   : > { %v1332_v12 = vadd.f32 %v1324_v63, %v1291_v33  ;;  %2033 = vmatmul.mubr.f32.vlgmr.msra.gmra.mxu1 %v1359_v27  ;;  %v1354_v18 = vadd.f32 %v1804_v56, %v1339_v31  ;;  %v1342_v40 = vadd.f32 %v1334_v35, %v1170_v36 }
 0x139   : > { %2035 = vmatprep.mubr.f32.mxu1 %v1360_v38  ;;  %v1364_v42 = vmax.f32 %v1356_v50, 0.0 }
 0x13a   : > { %v1340_v41 = vadd.f32 %v1332_v12, %v1168_v39  ;;  %v1362_v49 = vmax.f32 %v1354_v18, 0.0  ;;  %v1357_v53 = vadd.f32 %v1804_v56, %v1342_v40 }
 0x13c   : > { %2036 = vmatmul.mubr.f32.gmra.mxu1 %v1361_v48  ;;  %v1355_v51 = vadd.f32 %v1804_v56, %v1340_v41  ;;  %v1365_v43 = vmax.f32 %v1357_v53, 0.0 }
 0x13d   : > { %2038 = vmatprep.mubr.f32.mxu1 %v1362_v49 }
 0x13e   : > { %v1363_v52 = vmax.f32 %v1355_v51, 0.0 }
 0x140   : > { %2039 = vmatmul.mubr.f32.gmra.mxu1 %v1363_v52 }
 0x141   : > { %2041 = vmatprep.mubr.f32.mxu1 %v1364_v42 }
 0x144   : > { %2042 = vmatmul.mubr.f32.gmra.mxu1 %v1365_v43 }
 0x1f8   : > { %v2034_v54 = vpop.f32.mrf.mxu1 }
 0x1f9   : > { %v1461_v55 = vadd.f32 %v2034_v54, %v1805_v4 }
 0x1fa   : > { %v1455_v58 = vpop.f32.mrf.mxu1 }
 0x1fb   : > { %1496 = vmax.xlane.f32.xlu0 %v1461_v55  ;;  %v1456_v60 = vadd.f32 %v1805_v4, %v1455_v58 }
 0x1fc   : > { %v2037_v8 = vpop.f32.mrf.mxu1 }
 0x1fd   : > { %v1471_v0 = vadd.f32 %v2037_v8, %v1805_v4 }
 0x1fe   : > { %v1465_v14 = vpop.f32.mrf.mxu1 }
 0x1ff   : > { %1500 = vmax.xlane.f32.xlu1 %v1471_v0  ;;  %1494 = vmax.xlane.f32.xlu0 %v1456_v60  ;;  %v1466_v56 = vadd.f32 %v1805_v4, %v1465_v14 }
 0x200   : > { %v2040_v9 = vpop.f32.mrf.mxu1 }
 0x201   : > { %v1481_v11 = vadd.f32 %v2040_v9, %v1805_v4 }
 0x202   : > { %v1475_v59 = vpop.f32.mrf.mxu1 }
 0x203   : > { %v1476_v57 = vadd.f32 %v1805_v4, %v1475_v59  ;;  %1498 = vmax.xlane.f32.xlu1 %v1466_v56 }
 0x204   : > { %v2043_v61 = vpop.f32.mrf.mxu1 }
 0x205   : > { %1502 = vmax.xlane.f32.xlu0 %v1476_v57  ;;  %v1491_v1 = vadd.f32 %v2043_v61, %v1805_v4 }
 0x206   : > { %v1485_v62 = vpop.f32.mrf.mxu1 }
 0x207   : > { %v1486_v16 = vadd.f32 %v1805_v4, %v1485_v62  ;;  %1504 = vmax.xlane.f32.xlu1 %v1481_v11 }
 0x209   : > { %1506 = vmax.xlane.f32.xlu0 %v1486_v16 }
 0x20b   : > { %1508 = vmax.xlane.f32.xlu1 %v1491_v1 }
 0x284   : > { %v1497_v2 = vpop.xlane.xlu0 %1496 }
 0x285   : > { %v2455_v17 = vsub.f32 %v1461_v55, %v1497_v2 }
 0x287   : > { %v1520_v19 = vmul.f32 1.442695, %v2455_v17 }
 0x288   : > { %v1501_v20 = vpop.xlane.xlu1 %1500  ;;  %v1495_v5 = vpop.xlane.xlu0 %1494 }
 0x289   : > { %2090 = vpow2.f32 %v1520_v19  ;;  %v2458_v7 = vsub.f32 %v1471_v0, %v1501_v20  ;;  %v2460_v23 = vsub.f32 %v1456_v60, %v1495_v5 }
 0x28b   : > { %v1524_v25 = vmul.f32 1.442695, %v2458_v7  ;;  %v1518_v44 = vmul.f32 1.442695, %v2460_v23 }
 0x28c   : > { %v1499_v10 = vpop.xlane.xlu1 %1498 }
 0x28d   : > { %2092 = vpow2.f32 %v1524_v25  ;;  %v2464_v26 = vsub.f32 %v1466_v56, %v1499_v10 }
 0x28e   : > { %2094 = vpow2.f32 %v1518_v44  ;;  %v1503_v13 = vpop.xlane.xlu0 %1502 }
 0x28f   : > { %v1522_v28 = vmul.f32 1.442695, %v2464_v26  ;;  %v2467_v3 = vsub.f32 %v1476_v57, %v1503_v13 }
 0x290   : > { %v1505_v21 = vpop.xlane.xlu1 %1504 }
 0x291   : > { %2096 = vpow2.f32 %v1522_v28  ;;  %v2469_v15 = vsub.f32 %v1481_v11, %v1505_v21  ;;  %v1526_v32 = vmul.f32 1.442695, %v2467_v3 }
 0x292   : > { %v1507_v45 = vpop.xlane.xlu0 %1506 }
 0x293   : > { %v1528_v46 = vmul.f32 1.442695, %v2469_v15  ;;  %v2473_v24 = vsub.f32 %v1486_v16, %v1507_v45 }
 0x294   : > { %v1509_v29 = vpop.xlane.xlu1 %1508 }
 0x295   : > { %2098 = vpow2.f32 %v1528_v46  ;;  %v2475_v6 = vsub.f32 %v1491_v1, %v1509_v29  ;;  %v1530_v34 = vmul.f32 1.442695, %v2473_v24 }
 0x296   : > { %v2091_v22 = vpop.eup %2090  ;;  %2100 = vpow2.f32 %v1526_v32 }
 0x297   : > { %v1532_v47 = vmul.f32 1.442695, %v2475_v6  ;;  %1536 = vadd.xlane.f32.xlu1 %v2091_v22 }
 0x299   : > { %2102 = vpow2.f32 %v1532_v47 }
 0x29a   : > { %v2093_v27 = vpop.eup %2092  ;;  %2104 = vpow2.f32 %v1530_v34 }
 0x29b   : > { %v2095_v31 = vpop.eup %2094  ;;  %1540 = vadd.xlane.f32.xlu1 %v2093_v27 }
 0x29c   : > { %1534 = vadd.xlane.f32.xlu0 %v2095_v31 }
 0x29e   : > { %v2097_v35 = vpop.eup %2096 }
 0x2a0   : > { %1538 = vadd.xlane.f32.xlu0 %v2097_v35 }
 0x2a2   : > { %v2099_v30 = vpop.eup %2098 }
 0x2a3   : > { %v2101_v33 = vpop.eup %2100  ;;  %1544 = vadd.xlane.f32.xlu1 %v2099_v30 }
 0x2a4   : > { %1542 = vadd.xlane.f32.xlu0 %v2101_v33 }
 0x2a6   : > { %v2103_v37 = vpop.eup %2102 }
 0x2a7   : > { %v2105_v63 = vpop.eup %2104  ;;  %1548 = vadd.xlane.f32.xlu1 %v2103_v37 }
 0x2a8   : > { %1546 = vadd.xlane.f32.xlu0 %v2105_v63 }
 0x320   : > { %v1537_v38 = vpop.xlane.xlu1 %1536 }
 0x321   : > { %2106 = vlog2.f32 %v1537_v38 }
 0x324   : > { %v1541_v36 = vpop.xlane.xlu1 %1540 }
 0x325   : > { %2108 = vlog2.f32 %v1541_v36  ;;  %v1535_v39 = vpop.xlane.xlu0 %1534 }
 0x326   : > { %2110 = vlog2.f32 %v1535_v39 }
 0x329   : > { %v1539_v12 = vpop.xlane.xlu0 %1538 }
 0x32a   : > { %2112 = vlog2.f32 %v1539_v12 }
 0x32c   : > { %v1545_v18 = vpop.xlane.xlu1 %1544 }
 0x32d   : > { %2114 = vlog2.f32 %v1545_v18  ;;  %v1543_v40 = vpop.xlane.xlu0 %1542 }
 0x32e   : > { %v2107_v41 = vpop.eup %2106  ;;  %2116 = vlog2.f32 %v1543_v40 }
 0x32f   : > { %v1553_v48 = vmul.f32 0.6931472, %v2107_v41 }
 0x330   : > { %v1549_v49 = vpop.xlane.xlu1 %1548 }
 0x331   : > { %v1567_v50 = vsub.f32 %v2455_v17, %v1553_v48  ;;  %2118 = vlog2.f32 %v1549_v49  ;;  %v1547_v51 = vpop.xlane.xlu0 %1546 }
 0x332   : > { %v2109_v52 = vpop.eup %2108  ;;  %2120 = vlog2.f32 %v1547_v51 }
 0x333   : > { %v2111_v53 = vpop.eup %2110  ;;  %1575 = vst [vmem:[%s2483_s14 + $0x8] sm:$0xff] %v1567_v50  ;;  %v1557_v42 = vmul.f32 0.6931472, %v2109_v52 }
 0x334   : > { %v1551_v43 = vmul.f32 0.6931472, %v2111_v53 }
 0x335   : > { %v1569_v4 = vsub.f32 %v2458_v7, %v1557_v42 }
 0x336   : > { %v1566_v54 = vsub.f32 %v2460_v23, %v1551_v43 }
 0x337   : > { %v2113_v55 = vpop.eup %2112  ;;  %1577 = vst [vmem:[%s2483_s14 + $0x18] sm:$0xff] %v1569_v4 }
 0x338   : > { %1574 = vst [vmem:[%s2483_s14] sm:$0xff] %v1566_v54  ;;  %v1555_v58 = vmul.f32 0.6931472, %v2113_v55 }
 0x33a   : > { %v2115_v8 = vpop.eup %2114  ;;  %v1568_v60 = vsub.f32 %v2464_v26, %v1555_v58 }
 0x33b   : > { %v2117_v0 = vpop.eup %2116  ;;  %v1561_v14 = vmul.f32 0.6931472, %v2115_v8 }
 0x33c   : > { %1576 = vst [vmem:[%s2483_s14 + $0x10] sm:$0xff] %v1568_v60  ;;  %v1559_v9 = vmul.f32 0.6931472, %v2117_v0 }
 0x33d   : > { %v1571_v56 = vsub.f32 %v2469_v15, %v1561_v14 }
 0x33e   : > { %v2119_v59 = vpop.eup %2118  ;;  %v1570_v57 = vsub.f32 %v2467_v3, %v1559_v9 }
 0x33f   : > { %v2121_v61 = vpop.eup %2120  ;;  %1579 = vst [vmem:[%s2483_s14 + $0x28] sm:$0xff] %v1571_v56  ;;  %v1565_v11 = vmul.f32 0.6931472, %v2119_v59 }
 0x340   : > { %1578 = vst [vmem:[%s2483_s14 + $0x20] sm:$0xff] %v1570_v57  ;;  %v1563_v62 = vmul.f32 0.6931472, %v2121_v61 }
 0x341   : > { %v1573_v16 = vsub.f32 %v2475_v6, %v1565_v11 }
 0x342   : > { %v1572_v1 = vsub.f32 %v2473_v24, %v1563_v62 }
 0x343   : > { %1581 = vst [vmem:[%s2483_s14 + $0x38] sm:$0xff] %v1573_v16 }
 0x344   : > { %1580 = vst [vmem:[%s2483_s14 + $0x30] sm:$0xff] %v1572_v1 }
 0x345 PF: > { %s17_s26 = sadd.s32 1, %s2144_s26   ;;  %s2524_s24 = smov %s2140_s25 }
 0x346   : > { %p14_p5 = scmp.ge.s32.totalorder %s17_s26, 4   ;;  %s2525_s25 = smov %s2527_s27 }
 0x348   :  { %16 = sbr.rel (!%p14_p5) target bundleno = 2 (0x2), region = 92 }

</bundles_post_ra>
